<compile_context>
chip_gen: v5e
topology: v5e:2x2
jax: 0.10.0
libtpu: 0.0.40
codegen_flags: <defaults>
</compile_context>

<pallas_src>
import math
import jax
import jax.numpy as jnp
from jax.experimental import pallas as pl
from jax.experimental.pallas import tpu as pltpu


def _round_up(x, m):
    return (x + m - 1) // m * m


def _cdiv(a, b):
    return (a + b - 1) // b


def _conv2d_full_stride1(x_pad, w_taps, b_col, *, max_tile_lanes=2048):
    """Stride-1 convolution of an already zero-padded NCHW image.

    x_pad : (N, C, Hp, Wp)   bfloat16, spatially zero-padded input
    w_taps: (KH, KW, F, C)   bfloat16 filters, one (F, C) tap per (kh, kw)
    b_col : (F, 1)           float32 bias column (zeros when bias=False)
    returns (N, F, H_full, W_full) float32 with
            H_full = Hp - KH + 1, W_full = Wp - KW + 1.

    kn2row formulation: the image is flattened to (C, Hp*Wp); for filter tap
    (kh, kw) the required patch row is the flat image shifted by
    off = kh*Wp + kw, so the kernel accumulates KH*KW bf16 MXU matmuls
        acc(F, tl) += W_tap(F, C) @ x_flat[:, p0+off : p0+off+tl]
    over a lane-dense tile of "gapped" output positions p = i*Wp + j.
    Columns j >= W_full are wrap-around garbage and are sliced away by the
    caller (a (Wp - W_full)/Wp compute overhead, typically a few percent).
    """
    N, C, Hp, Wp = x_pad.shape
    KH, KW, F, _ = w_taps.shape
    h_full = Hp - KH + 1
    w_full = Wp - KW + 1
    lg = h_full * Wp                         # gapped output length per image

    # Lane-dense L tiling: tiles are multiples of 128 lanes, ~max_tile_lanes.
    n_lt = _cdiv(lg, max_tile_lanes)
    tl = _round_up(_cdiv(lg, n_lt), 128)
    n_lt = _cdiv(lg, tl)
    lg_pad = n_lt * tl

    halo = (KH - 1) * Wp + (KW - 1)          # extra flat positions a tile reads
    win = _round_up(tl + halo, 128)          # input window per tile (lanes)
    lf = (n_lt - 1) * tl + win               # padded flat-image length

    # Flatten spatially (free, contiguous) and zero-pad the tail so every window
    # read is in bounds; the padded tail only ever feeds garbage columns.
    x_flat = jnp.pad(x_pad.reshape(N, C, Hp * Wp),
                     ((0, 0), (0, 0), (0, lf - Hp * Wp)))

    def kernel(x_ref, w_ref, b_ref, o_ref):
        if n_lt == 1:
            p0 = 0                                            # fully static path
        else:
            p0 = pl.multiple_of(pl.program_id(1) * tl, 128)   # aligned tile start
        # Window of the flattened image covering this tile + the filter halo.
        # Tap shifts are in-register lane rotations (XLU) on an f32 copy; the
        # MXU still consumes bf16 with an f32 accumulator.
        xwin = x_ref[:, pl.ds(p0, win)].astype(jnp.float32)   # (C, win)
        acc = jnp.zeros((F, tl), jnp.float32)
        for kh in range(KH):                                  # fused im2col
            for kw in range(KW):
                off = kh * Wp + kw
                shifted = xwin if off == 0 else pltpu.roll(xwin, win - off, axis=1)
                cols = shifted[:, :tl].astype(jnp.bfloat16)   # (C, tl)
                acc = acc + jnp.dot(w_ref[kh, kw], cols,
                                    preferred_element_type=jnp.float32)
        o_ref[...] = (acc + b_ref[...]).astype(o_ref.dtype)   # bias add in f32

    flops = 2 * N * lg_pad * F * C * KH * KW
    bytes_accessed = (x_flat.size * 2 + w_taps.size * 2 + b_col.size * 4
                      + N * F * lg_pad * 4)

    # TODO(synk): for very large C*Hp*Wp the per-image block should be tiled
    # over C (and over the flat axis with an explicit halo) instead of being
    # fully VMEM-resident.
    def run(weight_pipeline_mode):
        extra = ({} if weight_pipeline_mode is None
                 else dict(pipeline_mode=weight_pipeline_mode))
        return pl.pallas_call(
            kernel,
            out_shape=jax.ShapeDtypeStruct((N, F, lg_pad), jnp.float32),
            grid=(N, n_lt),
            in_specs=[
                # Full flattened image per batch element; the block index only
                # changes with n, so it is DMA'd from HBM once per image.
                pl.BlockSpec((None, C, lf), lambda n, i: (n, 0, 0)),
                # Grid-invariant filter taps and bias.
                pl.BlockSpec((KH, KW, F, C), lambda n, i: (0, 0, 0, 0), **extra),
                pl.BlockSpec((F, 1), lambda n, i: (0, 0), **extra),
            ],
            # Lane-dense output tile (tl is a multiple of 128 -> unmasked vst).
            out_specs=pl.BlockSpec((None, F, tl), lambda n, i: (n, 0, i)),
            compiler_params=pltpu.CompilerParams(
                dimension_semantics=("parallel", "parallel")),
            cost_estimate=pl.CostEstimate(flops=flops, transcendentals=0,
                                          bytes_accessed=bytes_accessed),
        )(x_flat, w_taps, b_col)

    try:
        # Weight/bias blocks never change across the grid: single-buffer them.
        out_g = run(pl.Buffered(1))
    except Exception:  # pragma: no cover - jax versions without Buffered(1)
        out_g = run(None)

    # Drop the tile-rounding tail and the per-row wrap-around garbage columns.
    return out_g[:, :, :lg].reshape(N, F, h_full, Wp)[:, :, :, :w_full]


class Conv2dPallas:
    """Mirrors the reference PyTorch Conv2d module (forward semantics)."""

    def __init__(self, in_channels, out_channels, kernel_size,
                 stride=1, padding=0, bias=True, key=None):
        if isinstance(kernel_size, tuple):
            kh, kw = kernel_size
        else:
            kh = kw = kernel_size
        self.kernel_size = (kh, kw)
        self.stride = stride if isinstance(stride, tuple) else (stride, stride)
        self.padding = padding if isinstance(padding, tuple) else (padding, padding)
        self.F = out_channels
        self.C = in_channels
        self.bias = bias

        k = 1.0 / (in_channels * kh * kw)
        bound = math.sqrt(k)
        if key is None:
            key = jax.random.PRNGKey(0)
        kw_key, kb_key = jax.random.split(key)
        # deterministic uniform init in [-sqrt(k), sqrt(k)] (same dist as torch)
        self.w = jax.random.uniform(
            kw_key, (out_channels, in_channels, kh, kw),
            dtype=jnp.float32, minval=-bound, maxval=bound)
        if bias:
            self.b = jax.random.uniform(
                kb_key, (out_channels,), dtype=jnp.float32,
                minval=-bound, maxval=bound)
        else:
            self.b = jnp.zeros((out_channels,), dtype=jnp.float32)

    def __call__(self, x):
        # x: (N, C, H, W) float32
        N, C, H, W = x.shape
        KH, KW = self.kernel_size
        SH, SW = self.stride
        PH, PW = self.padding
        H_out = (H + 2 * PH - KH) // SH + 1
        W_out = (W + 2 * PW - KW) // SW + 1

        # Cheap single-pass prep: spatial zero-pad + bf16 cast for the MXU.
        x_pad = jnp.pad(x, ((0, 0), (0, 0), (PH, PH), (PW, PW))).astype(jnp.bfloat16)
        w_taps = jnp.transpose(self.w, (2, 3, 0, 1)).astype(jnp.bfloat16)  # (KH,KW,F,C)
        b_col = self.b.reshape(self.F, 1).astype(jnp.float32)

        full = _conv2d_full_stride1(x_pad, w_taps, b_col)  # (N, F, H_full, W_full)
        if (SH, SW) != (1, 1):
            # TODO(synk): strided convs currently compute the stride-1 result and
            # subsample (SH*SW x extra MXU work); a stride-phase decomposition of
            # the input would feed the same fused kernel without the waste.
            full = full[:, :, ::SH, ::SW]
        return full[:, :, :H_out, :W_out]


if __name__ == "__main__":
    key = jax.random.PRNGKey(0)
    k_x, k_params = jax.random.split(key)

    N, C, H, W = 2, 4, 16, 16
    x = jax.random.normal(k_x, (N, C, H, W), dtype=jnp.float32)

    conv = Conv2dPallas(in_channels=C, out_channels=8, kernel_size=3,
                        stride=1, padding=1, bias=True, key=k_params)

    out = jax.block_until_ready(conv(x))
    assert out.shape == (N, 8, 16, 16)

    # Reference in f32; the kernel uses bf16 MXU inputs with f32 accumulation,
    # so allow bf16-level tolerance.
    ref = jax.lax.conv_general_dilated(
        x, conv.w, window_strides=conv.stride,
        padding=[(conv.padding[0], conv.padding[0]),
                 (conv.padding[1], conv.padding[1])],
        dimension_numbers=("NCHW", "OIHW", "NCHW"),
    ) + conv.b.reshape(1, -1, 1, 1)
    assert jnp.allclose(out, ref, atol=3e-2, rtol=3e-2)

    print("KERNEL_OK")
</pallas_src>

<mosaic_0001>
module attributes {stable_mosaic.version = 11 : i64} {
  func.func @kernel(%arg0: i32, %arg1: i32, %arg2: memref<1x4x512xbf16, #tpu.memory_space<vmem>>, %arg3: memref<3x3x8x4xbf16, #tpu.memory_space<vmem>>, %arg4: memref<8x1xf32, #tpu.memory_space<vmem>>, %arg5: memref<1x8x384xf32, #tpu.memory_space<vmem>>) attributes {dimension_semantics = [#tpu.dimension_semantics<parallel>, #tpu.dimension_semantics<parallel>], iteration_bounds = array<i64: 2, 1>, scalar_prefetch = 0 : i64, scratch_operands = 0 : i64, tpu.core_type = #tpu.core_type<tc>, window_params = [{transform_indices = @transform_0, window_bounds = array<i64: 1, 4, 512>}, {pipeline_mode = #tpu.pipeline_mode<synchronous>, transform_indices = @transform_1, window_bounds = array<i64: 3, 3, 8, 4>}, {pipeline_mode = #tpu.pipeline_mode<synchronous>, transform_indices = @transform_2, window_bounds = array<i64: 8, 1>}, {transform_indices = @transform_3, window_bounds = array<i64: 1, 8, 384>}]} {
    %c0 = arith.constant 0 : index
    %c0_0 = arith.constant 0 : index
    %c0_1 = arith.constant 0 : index
    %0 = vector.load %arg2[%c0, %c0_0, %c0_1] : memref<1x4x512xbf16, #tpu.memory_space<vmem>>, vector<1x4x512xbf16>
    %1 = vector.shape_cast %0 : vector<1x4x512xbf16> to vector<4x512xbf16>
    %2 = arith.extf %1 : vector<4x512xbf16> to vector<4x512xf32>
    %cst = arith.constant 0.000000e+00 : f32
    %3 = vector.broadcast %cst : f32 to vector<8x384xf32>
    %4 = vector.extract_strided_slice %2 {offsets = [0, 0], sizes = [4, 384], strides = [1, 1]} : vector<4x512xf32> to vector<4x384xf32>
    %5 = arith.truncf %4 : vector<4x384xf32> to vector<4x384xbf16>
    %c0_2 = arith.constant 0 : index
    %c0_3 = arith.constant 0 : index
    %c0_4 = arith.constant 0 : index
    %c0_5 = arith.constant 0 : index
    %6 = vector.load %arg3[%c0_2, %c0_3, %c0_4, %c0_5] : memref<3x3x8x4xbf16, #tpu.memory_space<vmem>>, vector<1x1x8x4xbf16>
    %7 = vector.shape_cast %6 : vector<1x1x8x4xbf16> to vector<8x4xbf16>
    %cst_6 = arith.constant dense<0.000000e+00> : vector<8x384xf32>
    %8 = tpu.matmul %7, %5, %cst_6 {dimension_numbers = #tpu.dot_dimension_numbers<[1], [0], [0], [1], [0, 0, 1, 1], [], []>} : vector<8x4xbf16>, vector<4x384xbf16>, vector<8x384xf32> -> vector<8x384xf32>
    %9 = arith.addf %3, %8 : vector<8x384xf32>
    %c511_i32 = arith.constant 511 : i32
    %10 = tpu.dynamic_rotate %2 by %c511_i32 dim 1 : vector<4x512xf32>, i32 -> vector<4x512xf32>
    %11 = vector.extract_strided_slice %10 {offsets = [0, 0], sizes = [4, 384], strides = [1, 1]} : vector<4x512xf32> to vector<4x384xf32>
    %12 = arith.truncf %11 : vector<4x384xf32> to vector<4x384xbf16>
    %c0_7 = arith.constant 0 : index
    %c1 = arith.constant 1 : index
    %c0_8 = arith.constant 0 : index
    %c0_9 = arith.constant 0 : index
    %13 = vector.load %arg3[%c0_7, %c1, %c0_8, %c0_9] : memref<3x3x8x4xbf16, #tpu.memory_space<vmem>>, vector<1x1x8x4xbf16>
    %14 = vector.shape_cast %13 : vector<1x1x8x4xbf16> to vector<8x4xbf16>
    %cst_10 = arith.constant dense<0.000000e+00> : vector<8x384xf32>
    %15 = tpu.matmul %14, %12, %cst_10 {dimension_numbers = #tpu.dot_dimension_numbers<[1], [0], [0], [1], [0, 0, 1, 1], [], []>} : vector<8x4xbf16>, vector<4x384xbf16>, vector<8x384xf32> -> vector<8x384xf32>
    %16 = arith.addf %9, %15 : vector<8x384xf32>
    %c510_i32 = arith.constant 510 : i32
    %17 = tpu.dynamic_rotate %2 by %c510_i32 dim 1 : vector<4x512xf32>, i32 -> vector<4x512xf32>
    %18 = vector.extract_strided_slice %17 {offsets = [0, 0], sizes = [4, 384], strides = [1, 1]} : vector<4x512xf32> to vector<4x384xf32>
    %19 = arith.truncf %18 : vector<4x384xf32> to vector<4x384xbf16>
    %c0_11 = arith.constant 0 : index
    %c2 = arith.constant 2 : index
    %c0_12 = arith.constant 0 : index
    %c0_13 = arith.constant 0 : index
    %20 = vector.load %arg3[%c0_11, %c2, %c0_12, %c0_13] : memref<3x3x8x4xbf16, #tpu.memory_space<vmem>>, vector<1x1x8x4xbf16>
    %21 = vector.shape_cast %20 : vector<1x1x8x4xbf16> to vector<8x4xbf16>
    %cst_14 = arith.constant dense<0.000000e+00> : vector<8x384xf32>
    %22 = tpu.matmul %21, %19, %cst_14 {dimension_numbers = #tpu.dot_dimension_numbers<[1], [0], [0], [1], [0, 0, 1, 1], [], []>} : vector<8x4xbf16>, vector<4x384xbf16>, vector<8x384xf32> -> vector<8x384xf32>
    %23 = arith.addf %16, %22 : vector<8x384xf32>
    %c494_i32 = arith.constant 494 : i32
    %24 = tpu.dynamic_rotate %2 by %c494_i32 dim 1 : vector<4x512xf32>, i32 -> vector<4x512xf32>
    %25 = vector.extract_strided_slice %24 {offsets = [0, 0], sizes = [4, 384], strides = [1, 1]} : vector<4x512xf32> to vector<4x384xf32>
    %26 = arith.truncf %25 : vector<4x384xf32> to vector<4x384xbf16>
    %c1_15 = arith.constant 1 : index
    %c0_16 = arith.constant 0 : index
    %c0_17 = arith.constant 0 : index
    %c0_18 = arith.constant 0 : index
    %27 = vector.load %arg3[%c1_15, %c0_16, %c0_17, %c0_18] : memref<3x3x8x4xbf16, #tpu.memory_space<vmem>>, vector<1x1x8x4xbf16>
    %28 = vector.shape_cast %27 : vector<1x1x8x4xbf16> to vector<8x4xbf16>
    %cst_19 = arith.constant dense<0.000000e+00> : vector<8x384xf32>
    %29 = tpu.matmul %28, %26, %cst_19 {dimension_numbers = #tpu.dot_dimension_numbers<[1], [0], [0], [1], [0, 0, 1, 1], [], []>} : vector<8x4xbf16>, vector<4x384xbf16>, vector<8x384xf32> -> vector<8x384xf32>
    %30 = arith.addf %23, %29 : vector<8x384xf32>
    %c493_i32 = arith.constant 493 : i32
    %31 = tpu.dynamic_rotate %2 by %c493_i32 dim 1 : vector<4x512xf32>, i32 -> vector<4x512xf32>
    %32 = vector.extract_strided_slice %31 {offsets = [0, 0], sizes = [4, 384], strides = [1, 1]} : vector<4x512xf32> to vector<4x384xf32>
    %33 = arith.truncf %32 : vector<4x384xf32> to vector<4x384xbf16>
    %c1_20 = arith.constant 1 : index
    %c1_21 = arith.constant 1 : index
    %c0_22 = arith.constant 0 : index
    %c0_23 = arith.constant 0 : index
    %34 = vector.load %arg3[%c1_20, %c1_21, %c0_22, %c0_23] : memref<3x3x8x4xbf16, #tpu.memory_space<vmem>>, vector<1x1x8x4xbf16>
    %35 = vector.shape_cast %34 : vector<1x1x8x4xbf16> to vector<8x4xbf16>
    %cst_24 = arith.constant dense<0.000000e+00> : vector<8x384xf32>
    %36 = tpu.matmul %35, %33, %cst_24 {dimension_numbers = #tpu.dot_dimension_numbers<[1], [0], [0], [1], [0, 0, 1, 1], [], []>} : vector<8x4xbf16>, vector<4x384xbf16>, vector<8x384xf32> -> vector<8x384xf32>
    %37 = arith.addf %30, %36 : vector<8x384xf32>
    %c492_i32 = arith.constant 492 : i32
    %38 = tpu.dynamic_rotate %2 by %c492_i32 dim 1 : vector<4x512xf32>, i32 -> vector<4x512xf32>
    %39 = vector.extract_strided_slice %38 {offsets = [0, 0], sizes = [4, 384], strides = [1, 1]} : vector<4x512xf32> to vector<4x384xf32>
    %40 = arith.truncf %39 : vector<4x384xf32> to vector<4x384xbf16>
    %c1_25 = arith.constant 1 : index
    %c2_26 = arith.constant 2 : index
    %c0_27 = arith.constant 0 : index
    %c0_28 = arith.constant 0 : index
    %41 = vector.load %arg3[%c1_25, %c2_26, %c0_27, %c0_28] : memref<3x3x8x4xbf16, #tpu.memory_space<vmem>>, vector<1x1x8x4xbf16>
    %42 = vector.shape_cast %41 : vector<1x1x8x4xbf16> to vector<8x4xbf16>
    %cst_29 = arith.constant dense<0.000000e+00> : vector<8x384xf32>
    %43 = tpu.matmul %42, %40, %cst_29 {dimension_numbers = #tpu.dot_dimension_numbers<[1], [0], [0], [1], [0, 0, 1, 1], [], []>} : vector<8x4xbf16>, vector<4x384xbf16>, vector<8x384xf32> -> vector<8x384xf32>
    %44 = arith.addf %37, %43 : vector<8x384xf32>
    %c476_i32 = arith.constant 476 : i32
    %45 = tpu.dynamic_rotate %2 by %c476_i32 dim 1 : vector<4x512xf32>, i32 -> vector<4x512xf32>
    %46 = vector.extract_strided_slice %45 {offsets = [0, 0], sizes = [4, 384], strides = [1, 1]} : vector<4x512xf32> to vector<4x384xf32>
    %47 = arith.truncf %46 : vector<4x384xf32> to vector<4x384xbf16>
    %c2_30 = arith.constant 2 : index
    %c0_31 = arith.constant 0 : index
    %c0_32 = arith.constant 0 : index
    %c0_33 = arith.constant 0 : index
    %48 = vector.load %arg3[%c2_30, %c0_31, %c0_32, %c0_33] : memref<3x3x8x4xbf16, #tpu.memory_space<vmem>>, vector<1x1x8x4xbf16>
    %49 = vector.shape_cast %48 : vector<1x1x8x4xbf16> to vector<8x4xbf16>
    %cst_34 = arith.constant dense<0.000000e+00> : vector<8x384xf32>
    %50 = tpu.matmul %49, %47, %cst_34 {dimension_numbers = #tpu.dot_dimension_numbers<[1], [0], [0], [1], [0, 0, 1, 1], [], []>} : vector<8x4xbf16>, vector<4x384xbf16>, vector<8x384xf32> -> vector<8x384xf32>
    %51 = arith.addf %44, %50 : vector<8x384xf32>
    %c475_i32 = arith.constant 475 : i32
    %52 = tpu.dynamic_rotate %2 by %c475_i32 dim 1 : vector<4x512xf32>, i32 -> vector<4x512xf32>
    %53 = vector.extract_strided_slice %52 {offsets = [0, 0], sizes = [4, 384], strides = [1, 1]} : vector<4x512xf32> to vector<4x384xf32>
    %54 = arith.truncf %53 : vector<4x384xf32> to vector<4x384xbf16>
    %c2_35 = arith.constant 2 : index
    %c1_36 = arith.constant 1 : index
    %c0_37 = arith.constant 0 : index
    %c0_38 = arith.constant 0 : index
    %55 = vector.load %arg3[%c2_35, %c1_36, %c0_37, %c0_38] : memref<3x3x8x4xbf16, #tpu.memory_space<vmem>>, vector<1x1x8x4xbf16>
    %56 = vector.shape_cast %55 : vector<1x1x8x4xbf16> to vector<8x4xbf16>
    %cst_39 = arith.constant dense<0.000000e+00> : vector<8x384xf32>
    %57 = tpu.matmul %56, %54, %cst_39 {dimension_numbers = #tpu.dot_dimension_numbers<[1], [0], [0], [1], [0, 0, 1, 1], [], []>} : vector<8x4xbf16>, vector<4x384xbf16>, vector<8x384xf32> -> vector<8x384xf32>
    %58 = arith.addf %51, %57 : vector<8x384xf32>
    %c474_i32 = arith.constant 474 : i32
    %59 = tpu.dynamic_rotate %2 by %c474_i32 dim 1 : vector<4x512xf32>, i32 -> vector<4x512xf32>
    %60 = vector.extract_strided_slice %59 {offsets = [0, 0], sizes = [4, 384], strides = [1, 1]} : vector<4x512xf32> to vector<4x384xf32>
    %61 = arith.truncf %60 : vector<4x384xf32> to vector<4x384xbf16>
    %c2_40 = arith.constant 2 : index
    %c2_41 = arith.constant 2 : index
    %c0_42 = arith.constant 0 : index
    %c0_43 = arith.constant 0 : index
    %62 = vector.load %arg3[%c2_40, %c2_41, %c0_42, %c0_43] : memref<3x3x8x4xbf16, #tpu.memory_space<vmem>>, vector<1x1x8x4xbf16>
    %63 = vector.shape_cast %62 : vector<1x1x8x4xbf16> to vector<8x4xbf16>
    %cst_44 = arith.constant dense<0.000000e+00> : vector<8x384xf32>
    %64 = tpu.matmul %63, %61, %cst_44 {dimension_numbers = #tpu.dot_dimension_numbers<[1], [0], [0], [1], [0, 0, 1, 1], [], []>} : vector<8x4xbf16>, vector<4x384xbf16>, vector<8x384xf32> -> vector<8x384xf32>
    %65 = arith.addf %58, %64 : vector<8x384xf32>
    %c0_45 = arith.constant 0 : index
    %c0_46 = arith.constant 0 : index
    %66 = vector.load %arg4[%c0_45, %c0_46] : memref<8x1xf32, #tpu.memory_space<vmem>>, vector<8x1xf32>
    %67 = vector.broadcast %66 : vector<8x1xf32> to vector<8x384xf32>
    %68 = arith.addf %65, %67 : vector<8x384xf32>
    %c0_47 = arith.constant 0 : index
    %c0_48 = arith.constant 0 : index
    %c0_49 = arith.constant 0 : index
    %69 = vector.load %arg5[%c0_47, %c0_48, %c0_49] : memref<1x8x384xf32, #tpu.memory_space<vmem>>, vector<1x8x384xf32>
    %70 = vector.shape_cast %69 : vector<1x8x384xf32> to vector<8x384xf32>
    %71 = vector.shape_cast %68 : vector<8x384xf32> to vector<1x8x384xf32>
    tpu.vector_store %arg5[%c0_47, %c0_48, %c0_49], %71 {strides = array<i32>} : memref<1x8x384xf32, #tpu.memory_space<vmem>>, vector<1x8x384xf32>,
    return
  }
  func.func @transform_0(%arg0: i32, %arg1: i32) -> (i32, i32, i32) {
    %c0_i32 = arith.constant 0 : i32
    %c0_i32_0 = arith.constant 0 : i32
    %c0_i32_1 = arith.constant 0 : i32
    return %arg0, %c0_i32, %c0_i32_0 : i32, i32, i32
  }
  func.func @transform_1(%arg0: i32, %arg1: i32) -> (i32, i32, i32, i32) {
    %c0_i32 = arith.constant 0 : i32
    %c0_i32_0 = arith.constant 0 : i32
    %c0_i32_1 = arith.constant 0 : i32
    %c0_i32_2 = arith.constant 0 : i32
    %c0_i32_3 = arith.constant 0 : i32
    return %c0_i32, %c0_i32_0, %c0_i32_1, %c0_i32_2 : i32, i32, i32, i32
  }
  func.func @transform_2(%arg0: i32, %arg1: i32) -> (i32, i32) {
    %c0_i32 = arith.constant 0 : i32
    %c0_i32_0 = arith.constant 0 : i32
    %c0_i32_1 = arith.constant 0 : i32
    return %c0_i32, %c0_i32_0 : i32, i32
  }
  func.func @transform_3(%arg0: i32, %arg1: i32) -> (i32, i32, i32) {
    %c0_i32 = arith.constant 0 : i32
    %c0_i32_0 = arith.constant 0 : i32
    return %arg0, %c0_i32, %arg1 : i32, i32, i32
  }
}

module attributes {stable_mosaic.version = 11 : i64} {
  func.func @kernel(%arg0: i32, %arg1: i32, %arg2: memref<1x4x512xbf16, #tpu.memory_space<vmem>>, %arg3: memref<3x3x8x4xbf16, #tpu.memory_space<vmem>>, %arg4: memref<8x1xf32, #tpu.memory_space<vmem>>, %arg5: memref<1x8x384xf32, #tpu.memory_space<vmem>>) attributes {dimension_semantics = [#tpu.dimension_semantics<parallel>, #tpu.dimension_semantics<parallel>], iteration_bounds = array<i64: 2, 1>, scalar_prefetch = 0 : i64, scratch_operands = 0 : i64, tpu.core_type = #tpu.core_type<tc>, window_params = [{transform_indices = @transform_0, window_bounds = array<i64: 1, 4, 512>}, {pipeline_mode = #tpu.pipeline_mode<synchronous>, transform_indices = @transform_1, window_bounds = array<i64: 3, 3, 8, 4>}, {pipeline_mode = #tpu.pipeline_mode<synchronous>, transform_indices = @transform_2, window_bounds = array<i64: 8, 1>}, {transform_indices = @transform_3, window_bounds = array<i64: 1, 8, 384>}]} {
    %c0 = arith.constant 0 : index
    %c0_0 = arith.constant 0 : index
    %c0_1 = arith.constant 0 : index
    %0 = vector.load %arg2[%c0, %c0_0, %c0_1] : memref<1x4x512xbf16, #tpu.memory_space<vmem>>, vector<1x4x512xbf16>
    %1 = vector.shape_cast %0 : vector<1x4x512xbf16> to vector<4x512xbf16>
    %2 = arith.extf %1 : vector<4x512xbf16> to vector<4x512xf32>
    %cst = arith.constant 0.000000e+00 : f32
    %3 = vector.broadcast %cst : f32 to vector<8x384xf32>
    %4 = vector.extract_strided_slice %2 {offsets = [0, 0], sizes = [4, 384], strides = [1, 1]} : vector<4x512xf32> to vector<4x384xf32>
    %5 = arith.truncf %4 : vector<4x384xf32> to vector<4x384xbf16>
    %c0_2 = arith.constant 0 : index
    %c0_3 = arith.constant 0 : index
    %c0_4 = arith.constant 0 : index
    %c0_5 = arith.constant 0 : index
    %6 = vector.load %arg3[%c0_2, %c0_3, %c0_4, %c0_5] : memref<3x3x8x4xbf16, #tpu.memory_space<vmem>>, vector<1x1x8x4xbf16>
    %7 = vector.shape_cast %6 : vector<1x1x8x4xbf16> to vector<8x4xbf16>
    %cst_6 = arith.constant dense<0.000000e+00> : vector<8x384xf32>
    %8 = tpu.matmul %7, %5, %cst_6 {dimension_numbers = #tpu.dot_dimension_numbers<[1], [0], [0], [1], [0, 0, 1, 1], [], []>} : vector<8x4xbf16>, vector<4x384xbf16>, vector<8x384xf32> -> vector<8x384xf32>
    %9 = arith.addf %3, %8 : vector<8x384xf32>
    %c511_i32 = arith.constant 511 : i32
    %10 = tpu.dynamic_rotate %2 by %c511_i32 dim 1 : vector<4x512xf32>, i32 -> vector<4x512xf32>
    %11 = vector.extract_strided_slice %10 {offsets = [0, 0], sizes = [4, 384], strides = [1, 1]} : vector<4x512xf32> to vector<4x384xf32>
    %12 = arith.truncf %11 : vector<4x384xf32> to vector<4x384xbf16>
    %c0_7 = arith.constant 0 : index
    %c1 = arith.constant 1 : index
    %c0_8 = arith.constant 0 : index
    %c0_9 = arith.constant 0 : index
    %13 = vector.load %arg3[%c0_7, %c1, %c0_8, %c0_9] : memref<3x3x8x4xbf16, #tpu.memory_space<vmem>>, vector<1x1x8x4xbf16>
    %14 = vector.shape_cast %13 : vector<1x1x8x4xbf16> to vector<8x4xbf16>
    %cst_10 = arith.constant dense<0.000000e+00> : vector<8x384xf32>
    %15 = tpu.matmul %14, %12, %cst_10 {dimension_numbers = #tpu.dot_dimension_numbers<[1], [0], [0], [1], [0, 0, 1, 1], [], []>} : vector<8x4xbf16>, vector<4x384xbf16>, vector<8x384xf32> -> vector<8x384xf32>
    %16 = arith.addf %9, %15 : vector<8x384xf32>
    %c510_i32 = arith.constant 510 : i32
    %17 = tpu.dynamic_rotate %2 by %c510_i32 dim 1 : vector<4x512xf32>, i32 -> vector<4x512xf32>
    %18 = vector.extract_strided_slice %17 {offsets = [0, 0], sizes = [4, 384], strides = [1, 1]} : vector<4x512xf32> to vector<4x384xf32>
    %19 = arith.truncf %18 : vector<4x384xf32> to vector<4x384xbf16>
    %c0_11 = arith.constant 0 : index
    %c2 = arith.constant 2 : index
    %c0_12 = arith.constant 0 : index
    %c0_13 = arith.constant 0 : index
    %20 = vector.load %arg3[%c0_11, %c2, %c0_12, %c0_13] : memref<3x3x8x4xbf16, #tpu.memory_space<vmem>>, vector<1x1x8x4xbf16>
    %21 = vector.shape_cast %20 : vector<1x1x8x4xbf16> to vector<8x4xbf16>
    %cst_14 = arith.constant dense<0.000000e+00> : vector<8x384xf32>
    %22 = tpu.matmul %21, %19, %cst_14 {dimension_numbers = #tpu.dot_dimension_numbers<[1], [0], [0], [1], [0, 0, 1, 1], [], []>} : vector<8x4xbf16>, vector<4x384xbf16>, vector<8x384xf32> -> vector<8x384xf32>
    %23 = arith.addf %16, %22 : vector<8x384xf32>
    %c494_i32 = arith.constant 494 : i32
    %24 = tpu.dynamic_rotate %2 by %c494_i32 dim 1 : vector<4x512xf32>, i32 -> vector<4x512xf32>
    %25 = vector.extract_strided_slice %24 {offsets = [0, 0], sizes = [4, 384], strides = [1, 1]} : vector<4x512xf32> to vector<4x384xf32>
    %26 = arith.truncf %25 : vector<4x384xf32> to vector<4x384xbf16>
    %c1_15 = arith.constant 1 : index
    %c0_16 = arith.constant 0 : index
    %c0_17 = arith.constant 0 : index
    %c0_18 = arith.constant 0 : index
    %27 = vector.load %arg3[%c1_15, %c0_16, %c0_17, %c0_18] : memref<3x3x8x4xbf16, #tpu.memory_space<vmem>>, vector<1x1x8x4xbf16>
    %28 = vector.shape_cast %27 : vector<1x1x8x4xbf16> to vector<8x4xbf16>
    %cst_19 = arith.constant dense<0.000000e+00> : vector<8x384xf32>
    %29 = tpu.matmul %28, %26, %cst_19 {dimension_numbers = #tpu.dot_dimension_numbers<[1], [0], [0], [1], [0, 0, 1, 1], [], []>} : vector<8x4xbf16>, vector<4x384xbf16>, vector<8x384xf32> -> vector<8x384xf32>
    %30 = arith.addf %23, %29 : vector<8x384xf32>
    %c493_i32 = arith.constant 493 : i32
    %31 = tpu.dynamic_rotate %2 by %c493_i32 dim 1 : vector<4x512xf32>, i32 -> vector<4x512xf32>
    %32 = vector.extract_strided_slice %31 {offsets = [0, 0], sizes = [4, 384], strides = [1, 1]} : vector<4x512xf32> to vector<4x384xf32>
    %33 = arith.truncf %32 : vector<4x384xf32> to vector<4x384xbf16>
    %c1_20 = arith.constant 1 : index
    %c1_21 = arith.constant 1 : index
    %c0_22 = arith.constant 0 : index
    %c0_23 = arith.constant 0 : index
    %34 = vector.load %arg3[%c1_20, %c1_21, %c0_22, %c0_23] : memref<3x3x8x4xbf16, #tpu.memory_space<vmem>>, vector<1x1x8x4xbf16>
    %35 = vector.shape_cast %34 : vector<1x1x8x4xbf16> to vector<8x4xbf16>
    %cst_24 = arith.constant dense<0.000000e+00> : vector<8x384xf32>
    %36 = tpu.matmul %35, %33, %cst_24 {dimension_numbers = #tpu.dot_dimension_numbers<[1], [0], [0], [1], [0, 0, 1, 1], [], []>} : vector<8x4xbf16>, vector<4x384xbf16>, vector<8x384xf32> -> vector<8x384xf32>
    %37 = arith.addf %30, %36 : vector<8x384xf32>
    %c492_i32 = arith.constant 492 : i32
    %38 = tpu.dynamic_rotate %2 by %c492_i32 dim 1 : vector<4x512xf32>, i32 -> vector<4x512xf32>
    %39 = vector.extract_strided_slice %38 {offsets = [0, 0], sizes = [4, 384], strides = [1, 1]} : vector<4x512xf32> to vector<4x384xf32>
    %40 = arith.truncf %39 : vector<4x384xf32> to vector<4x384xbf16>
    %c1_25 = arith.constant 1 : index
    %c2_26 = arith.constant 2 : index
    %c0_27 = arith.constant 0 : index
    %c0_28 = arith.constant 0 : index
    %41 = vector.load %arg3[%c1_25, %c2_26, %c0_27, %c0_28] : memref<3x3x8x4xbf16, #tpu.memory_space<vmem>>, vector<1x1x8x4xbf16>
    %42 = vector.shape_cast %41 : vector<1x1x8x4xbf16> to vector<8x4xbf16>
    %cst_29 = arith.constant dense<0.000000e+00> : vector<8x384xf32>
    %43 = tpu.matmul %42, %40, %cst_29 {dimension_numbers = #tpu.dot_dimension_numbers<[1], [0], [0], [1], [0, 0, 1, 1], [], []>} : vector<8x4xbf16>, vector<4x384xbf16>, vector<8x384xf32> -> vector<8x384xf32>
    %44 = arith.addf %37, %43 : vector<8x384xf32>
    %c476_i32 = arith.constant 476 : i32
    %45 = tpu.dynamic_rotate %2 by %c476_i32 dim 1 : vector<4x512xf32>, i32 -> vector<4x512xf32>
    %46 = vector.extract_strided_slice %45 {offsets = [0, 0], sizes = [4, 384], strides = [1, 1]} : vector<4x512xf32> to vector<4x384xf32>
    %47 = arith.truncf %46 : vector<4x384xf32> to vector<4x384xbf16>
    %c2_30 = arith.constant 2 : index
    %c0_31 = arith.constant 0 : index
    %c0_32 = arith.constant 0 : index
    %c0_33 = arith.constant 0 : index
    %48 = vector.load %arg3[%c2_30, %c0_31, %c0_32, %c0_33] : memref<3x3x8x4xbf16, #tpu.memory_space<vmem>>, vector<1x1x8x4xbf16>
    %49 = vector.shape_cast %48 : vector<1x1x8x4xbf16> to vector<8x4xbf16>
    %cst_34 = arith.constant dense<0.000000e+00> : vector<8x384xf32>
    %50 = tpu.matmul %49, %47, %cst_34 {dimension_numbers = #tpu.dot_dimension_numbers<[1], [0], [0], [1], [0, 0, 1, 1], [], []>} : vector<8x4xbf16>, vector<4x384xbf16>, vector<8x384xf32> -> vector<8x384xf32>
    %51 = arith.addf %44, %50 : vector<8x384xf32>
    %c475_i32 = arith.constant 475 : i32
    %52 = tpu.dynamic_rotate %2 by %c475_i32 dim 1 : vector<4x512xf32>, i32 -> vector<4x512xf32>
    %53 = vector.extract_strided_slice %52 {offsets = [0, 0], sizes = [4, 384], strides = [1, 1]} : vector<4x512xf32> to vector<4x384xf32>
    %54 = arith.truncf %53 : vector<4x384xf32> to vector<4x384xbf16>
    %c2_35 = arith.constant 2 : index
    %c1_36 = arith.constant 1 : index
    %c0_37 = arith.constant 0 : index
    %c0_38 = arith.constant 0 : index
    %55 = vector.load %arg3[%c2_35, %c1_36, %c0_37, %c0_38] : memref<3x3x8x4xbf16, #tpu.memory_space<vmem>>, vector<1x1x8x4xbf16>
    %56 = vector.shape_cast %55 : vector<1x1x8x4xbf16> to vector<8x4xbf16>
    %cst_39 = arith.constant dense<0.000000e+00> : vector<8x384xf32>
    %57 = tpu.matmul %56, %54, %cst_39 {dimension_numbers = #tpu.dot_dimension_numbers<[1], [0], [0], [1], [0, 0, 1, 1], [], []>} : vector<8x4xbf16>, vector<4x384xbf16>, vector<8x384xf32> -> vector<8x384xf32>
    %58 = arith.addf %51, %57 : vector<8x384xf32>
    %c474_i32 = arith.constant 474 : i32
    %59 = tpu.dynamic_rotate %2 by %c474_i32 dim 1 : vector<4x512xf32>, i32 -> vector<4x512xf32>
    %60 = vector.extract_strided_slice %59 {offsets = [0, 0], sizes = [4, 384], strides = [1, 1]} : vector<4x512xf32> to vector<4x384xf32>
    %61 = arith.truncf %60 : vector<4x384xf32> to vector<4x384xbf16>
    %c2_40 = arith.constant 2 : index
    %c2_41 = arith.constant 2 : index
    %c0_42 = arith.constant 0 : index
    %c0_43 = arith.constant 0 : index
    %62 = vector.load %arg3[%c2_40, %c2_41, %c0_42, %c0_43] : memref<3x3x8x4xbf16, #tpu.memory_space<vmem>>, vector<1x1x8x4xbf16>
    %63 = vector.shape_cast %62 : vector<1x1x8x4xbf16> to vector<8x4xbf16>
    %cst_44 = arith.constant dense<0.000000e+00> : vector<8x384xf32>
    %64 = tpu.matmul %63, %61, %cst_44 {dimension_numbers = #tpu.dot_dimension_numbers<[1], [0], [0], [1], [0, 0, 1, 1], [], []>} : vector<8x4xbf16>, vector<4x384xbf16>, vector<8x384xf32> -> vector<8x384xf32>
    %65 = arith.addf %58, %64 : vector<8x384xf32>
    %c0_45 = arith.constant 0 : index
    %c0_46 = arith.constant 0 : index
    %66 = vector.load %arg4[%c0_45, %c0_46] : memref<8x1xf32, #tpu.memory_space<vmem>>, vector<8x1xf32>
    %67 = vector.broadcast %66 : vector<8x1xf32> to vector<8x384xf32>
    %68 = arith.addf %65, %67 : vector<8x384xf32>
    %c0_47 = arith.constant 0 : index
    %c0_48 = arith.constant 0 : index
    %c0_49 = arith.constant 0 : index
    %69 = vector.load %arg5[%c0_47, %c0_48, %c0_49] : memref<1x8x384xf32, #tpu.memory_space<vmem>>, vector<1x8x384xf32>
    %70 = vector.shape_cast %69 : vector<1x8x384xf32> to vector<8x384xf32>
    %71 = vector.shape_cast %68 : vector<8x384xf32> to vector<1x8x384xf32>
    tpu.vector_store %arg5[%c0_47, %c0_48, %c0_49], %71 {strides = array<i32>} : memref<1x8x384xf32, #tpu.memory_space<vmem>>, vector<1x8x384xf32>,
    return
  }
  func.func @transform_0(%arg0: i32, %arg1: i32) -> (i32, i32, i32) {
    %c0_i32 = arith.constant 0 : i32
    %c0_i32_0 = arith.constant 0 : i32
    %c0_i32_1 = arith.constant 0 : i32
    return %arg0, %c0_i32, %c0_i32_0 : i32, i32, i32
  }
  func.func @transform_1(%arg0: i32, %arg1: i32) -> (i32, i32, i32, i32) {
    %c0_i32 = arith.constant 0 : i32
    %c0_i32_0 = arith.constant 0 : i32
    %c0_i32_1 = arith.constant 0 : i32
    %c0_i32_2 = arith.constant 0 : i32
    %c0_i32_3 = arith.constant 0 : i32
    return %c0_i32, %c0_i32_0, %c0_i32_1, %c0_i32_2 : i32, i32, i32, i32
  }
  func.func @transform_2(%arg0: i32, %arg1: i32) -> (i32, i32) {
    %c0_i32 = arith.constant 0 : i32
    %c0_i32_0 = arith.constant 0 : i32
    %c0_i32_1 = arith.constant 0 : i32
    return %c0_i32, %c0_i32_0 : i32, i32
  }
  func.func @transform_3(%arg0: i32, %arg1: i32) -> (i32, i32, i32) {
    %c0_i32 = arith.constant 0 : i32
    %c0_i32_0 = arith.constant 0 : i32
    return %arg0, %c0_i32, %arg1 : i32, i32, i32
  }
}

</mosaic_0001>

<bundles_post_ra>
// kernel: tpu_custom_call.1
= control target key start
LH: loop header
LB: loop body
LE: loop exit
PB: predicated region body
PF: predicated region fallthrough
CT: control target
= control target key end

     0   :  { %8 = vsyncpa [#allocation3], 0  ;;  %s1582_s0 = inlined_call_operand.vmem [shape: bf16[2,4,512], index: 0, kind: input, shape index: {}]   ;;  %s1583_s1 = inlined_call_operand.vmem [shape: bf16[3,3,8,4], index: 1, kind: input, shape index: {}]   ;;  %s1584_s2 = inlined_call_operand.vmem [shape: f32[8,1], index: 2, kind: input, shape index: {}]   ;;  %s1585_s3 = inlined_call_operand.hbm [shape: f32[2,8,384], index: 3, kind: output, shape index: {}]  }
   0x1   :  { %10 = vsyncpa [#allocation3 + $0x1], 0  ;;  %s1304_s12 = smov 0   ;;  %s1306_s13 = smov 0  }
   0x2   :  { %s1308_s14 = smov 0   ;;  %s1310_s15 = smov 0  }
   0x3   :  { %s1312_s16 = smov 0   ;;  %s1314_s17 = smov 0  }
   0x4 LB: > { %s1012_s18 = sadd.s32 4294967295, %s1273_s17   ;;  %s1013_s19 = sadd.s32 4294967294, %s1273_s17   ;;  %s1273_s17 = sphi %s1314_s17, %s16_s17   ;;  %s1269_s16 = sphi %s1312_s16, %s1592_s16   ;;  %s1265_s15 = sphi %s1310_s15, %s1591_s15   ;;  %s1261_s14 = sphi %s1308_s14, %s1590_s14   ;;  %s1257_s13 = sphi %s1306_s13, %s1589_s13   ;;  %s1253_s12 = sphi %s1304_s12, %s1588_s12  }
   0x5   : > { %s28_s20 = sadd.s32 1, %s1269_s16  ;;  %s105_s21 = sadd.s32 1, %s1261_s14 }
   0x6   : > { %p30_p0 = scmp.ge.s32.totalorder %s28_s20, 2  ;;  %p115_p1 = scmp.ne.s32.totalorder %s1261_s14, %s1257_s13 }
   0x7   : > { %p116_p2 = scmp.eq.s32.totalorder %s1012_s18, 1  ;;  %p121_p3 = scmp.ne.s32.totalorder %s1257_s13, %s1253_s12 }
   0x8   : > { %s1594_s20 = smov (%p30_p0, %s28_s20), 0  ;;  %p122_p5 = scmp.eq.s32.totalorder %s1013_s19, 1 }
   0x9   : > { %p1344_p4 = por %p116_p2, %p115_p1  ;;  %s100_s23 = ssub.s32 %s1269_s16, %s1594_s20 }
   0xa   : > { %p1016_p6 = scmp.ge.s32.totalorder %s1273_s17, 1  ;;  %p103_p7 = scmp.eq.s32.totalorder %s100_s23, 0 }
   0xb   : > { %p1351_p8 = por %p122_p5, %p121_p3  ;;  %p154_p9 = scmp.lt.s32.totalorder %s1273_s17, 3 }
   0xc   : > { %s1357_s25 = scalar_select %p103_p7, %s1261_s14, %s105_s21  }
   0xd   : > { %p155_p10 = pnand %p1016_p6, %p154_p9 }
   0xe   : > { %p178_p11 = scmp.lt.s32.totalorder (!%p155_p10), %s1265_s15, 1  ;;  %s1275_s4 = smov (!%p155_p10), 127  }
   0xf   : > { %158 = sbr.rel (%p155_p10) target bundleno = 407 (0x197), region = 32  ;;  %s1276_s5 = smov (!%p155_p10), 126  }
  0x10   : > { %s1277_s6 = smov (!%p155_p10), 110   ;;  %s1278_s7 = smov (!%p155_p10), 109  }
  0x11   : > { %s1279_s8 = smov (!%p155_p10), 108   ;;  %s1280_s9 = smov (!%p155_p10), 92  }
  0x12   : > { %s1281_s10 = smov (!%p155_p10), 91   ;;  %s1282_s11 = smov (!%p155_p10), 90  }
  0x13   : > { %s175_s23 = sand.u32 (!%p155_p10), 1, %s1257_s13  }
  0x14   : > { %s179_s26 = scalar_select %p178_p11, %s1265_s15, 1  ;;  %vm237_vm0 = vcmask 1041408   ;;  %vm233_vm1 = vcmask 31744   ;;  %v1398_v54 = vld [vmem:[%s1583_s1] sm:$0xf]  ;;  %v222_v55 = vlaneseq }
  0x16   : > { %s1057_s27 = sshll.u32 %s179_s26, 3  ;;  %v1402_v57 = vand.u32 127, %v222_v55  ;;  %s1059_s26 = smul.u32 24, %s1265_s15 }
  0x17   : > { %s182_s30 = scalar_lea.vmem %s1582_s0, %s1057_s27  ;;  %s1058_s27 = smul.u32 24, %s175_s23 }
  0x18   : > { %v185_v0 = vld [vmem:[%s182_s30] sm:$0xff]  ;;  %vm224_vm2 = vcmp.lt.s32.totalorder %v1402_v57, 127  ;;  %vm438_vm3 = vcmp.lt.s32.totalorder %v1402_v57, 110  ;;  %vm356_vm4 = vcmp.lt.s32.totalorder %v1402_v57, 126  ;;  %vm602_vm5 = vcmp.lt.s32.totalorder %v1402_v57, 108  ;;  %s937_s30 = scalar_lea.hbm %s1585_s3, %s1059_s26 }
  0x19   : > { %v1364_v1 = vunpack.c.h.bf16 %v185_v0  ;;  %v1366_v2 = vunpack.c.l.bf16 %v185_v0  ;;  %vm520_vm6 = vcmp.lt.s32.totalorder %v1402_v57, 109  ;;  %vm684_vm7 = vcmp.lt.s32.totalorder %v1402_v57, 92  ;;  %s177_s15 = scalar_lea.vmem [#allocation2], %s1058_s27 }
  0x1a   : > { %vm766_vm8 = vcmp.lt.s32.totalorder %v1402_v57, 91  ;;  %vm848_vm9 = vcmp.lt.s32.totalorder %v1402_v57, 90  ;;  %v911_v57 = vld [vmem:[%s1584_s2] sm:$0xff] }
  0x1b   : > { %192 = vst [vmem:[#allocation1 + $0x10] ss:$2 sm:$0xff] %v1364_v1 }
  0x1c   : > { %190 = vst [vmem:[#allocation1] ss:$2 sm:$0xff] %v1366_v2 }
  0x22   : > { %v1370_v3 = vld.sshfl [vmem:[#allocation1 + $0x10] sm:$0xff pattern:$0x75316420] }
  0x23   : > { %205 = vst [vmem:[#allocation1 + $0x10] ss:$2 sm:$0xff] %v1364_v1  ;;  %v1373_v4 = vld.sshfl [vmem:[#allocation1] sm:$0xff pattern:$0x75316420] }
  0x24   : > { %v1375_v5 = vld.sshfl [vmem:[#allocation1 + $0x8] sm:$0xff pattern:$0x75316420]  ;;  %v199_v52 = vpack.c.bf16 %v1373_v4, %v1373_v4 }
  0x25   : > { %203 = vst [vmem:[#allocation1] ss:$2 sm:$0xff] %v1366_v2 }
  0x26   : > { %v290_v53 = vsel %vm237_vm0, %v199_v52, 0 }
  0x27   : > { %305 = vmatpush.bf16.msra.mxu3 %v290_v53 }
  0x2a   : > { %v208_v6 = vld.sshfl [vmem:[#allocation1 + $0x10] sm:$0xff pattern:$0x75316420]  ;;  %v209_v7 = vld.sshfl [vmem:[#allocation1 + $0x18] sm:$0xff pattern:$0x75316420]  ;;  %1023 = vmatmul.msk.bf16.vlgmr.msra.gmra.mxu3 %vm233_vm1, %v1398_v54 }
  0x2b   : > { %v1124_v8 = vpack.i.bf16 %v209_v7, %v208_v6  ;;  %339 = vst [vmem:[#allocation1 + $0x10] ss:$2 sm:$0xff] %v1364_v1  ;;  %v1019_v6 = vld [vmem:[%s1583_s1 + $0x4] sm:$0xf] }
  0x2c   : > { %v206_v9 = vld.sshfl [vmem:[#allocation1] sm:$0xff pattern:$0x75316420]  ;;  %v207_v10 = vld.sshfl [vmem:[#allocation1 + $0x8] sm:$0xff pattern:$0x75316420] }
  0x2d   : > { %1125 = vrot.lane.b32.xlu0 %v1124_v8, %s1275_s4  ;;  %337 = vst [vmem:[#allocation1] ss:$2 sm:$0xff] %v1366_v2  ;;  %v1129_v11 = vpack.i.bf16 %v207_v10, %v206_v9  ;;  %v200_v8 = vpack.c.bf16 %v1375_v5, %v1375_v5  ;;  %v201_v9 = vpack.c.bf16 %v1370_v3, %v1370_v3 }
  0x32   : > { %v342_v12 = vld.sshfl [vmem:[#allocation1 + $0x10] sm:$0xff pattern:$0x75316420]  ;;  %v343_v13 = vld.sshfl [vmem:[#allocation1 + $0x18] sm:$0xff pattern:$0x75316420] }
  0x33   : > { %421 = vst [vmem:[#allocation1 + $0x10] ss:$2 sm:$0xff] %v1364_v1  ;;  %v1139_v19 = vpack.i.bf16 %v343_v13, %v342_v12 }
  0x34   : > { %v340_v14 = vld.sshfl [vmem:[#allocation1] sm:$0xff pattern:$0x75316420]  ;;  %v341_v15 = vld.sshfl [vmem:[#allocation1 + $0x8] sm:$0xff pattern:$0x75316420] }
  0x35   : > { %1130 = vrot.lane.b32.xlu0 %v1129_v11, %s1275_s4  ;;  %v1134_v16 = vpack.i.bf16 %v341_v15, %v340_v14  ;;  %419 = vst [vmem:[#allocation1] ss:$2 sm:$0xff] %v1366_v2  ;;  %s939_s4 = sshll.u32 %s177_s15, 4  ;;  %s940_s4 = int_to_ptr.vmem [resolvable:$true] %s939_s4 }
  0x37   : > { %1135 = vrot.lane.b32.xlu1 %v1134_v16, %s1276_s5 }
  0x3a   : > { %v424_v17 = vld.sshfl [vmem:[#allocation1 + $0x10] sm:$0xff pattern:$0x75316420]  ;;  %v425_v18 = vld.sshfl [vmem:[#allocation1 + $0x18] sm:$0xff pattern:$0x75316420] }
  0x3b   : > { %503 = vst [vmem:[#allocation1 + $0x10] ss:$2 sm:$0xff] %v1364_v1 }
  0x3c   : > { %v423_v20 = vld.sshfl [vmem:[#allocation1 + $0x8] sm:$0xff pattern:$0x75316420]  ;;  %v422_v21 = vld.sshfl [vmem:[#allocation1] sm:$0xff pattern:$0x75316420] }
  0x3d   : > { %v1144_v22 = vpack.i.bf16 %v424_v17, %v423_v20  ;;  %501 = vst [vmem:[#allocation1] ss:$2 sm:$0xff] %v1366_v2  ;;  %v1149_v26 = vpack.i.bf16 %v425_v18, %v422_v21 }
  0x3f   : > { %1140 = vrot.lane.b32.xlu1 %v1139_v19, %s1276_s5  ;;  %1145 = vrot.lane.b32.xlu2 %v1144_v22, %s1277_s6  ;;  %s941_s5 = sshll.u32 %s937_s30, 4  ;;  %s942_s5 = int_to_ptr.hbm [resolvable:$true] %s941_s5 }
  0x42   : > { %v506_v23 = vld.sshfl [vmem:[#allocation1 + $0x10] sm:$0xff pattern:$0x75316420]  ;;  %v507_v24 = vld.sshfl [vmem:[#allocation1 + $0x18] sm:$0xff pattern:$0x75316420] }
  0x43   : > { %v1154_v25 = vpack.i.bf16 %v507_v24, %v506_v23  ;;  %585 = vst [vmem:[#allocation1 + $0x10] ss:$2 sm:$0xff] %v1364_v1  ;;  %v293_v23 = vsel %vm237_vm0, %v200_v8, 0  ;;  %v296_v24 = vsel %vm237_vm0, %v201_v9, 0  ;;  %v1030_v8 = vld [vmem:[%s1583_s1 + $0xc] sm:$0xf] }
  0x44   : > { %v504_v27 = vld.sshfl [vmem:[#allocation1] sm:$0xff pattern:$0x75316420]  ;;  %v505_v28 = vld.sshfl [vmem:[#allocation1 + $0x8] sm:$0xff pattern:$0x75316420] }
  0x45   : > { %1155 = vrot.lane.b32.xlu0 %v1154_v25, %s1278_s7  ;;  %v1159_v29 = vpack.i.bf16 %v505_v28, %v504_v27  ;;  %583 = vst [vmem:[#allocation1] ss:$2 sm:$0xff] %v1366_v2 }
  0x47   : > { %1160 = vrot.lane.b32.xlu1 %v1159_v29, %s1278_s7  ;;  %1150 = vrot.lane.b32.xlu2 %v1149_v26, %s1277_s6  ;;  %s924_s6 = scalar_lea.sflag [#allocation3], %s175_s23  ;;  %s1209_s7 = sshra.s32 %s942_s5, 4  ;;  %s1210_s7 = int_to_ptr.hbm [resolvable:$true] %s1209_s7 }
  0x48   : > { %p1216_p1 = scmp.lt.s32.totalorder %s1210_s7, %s1585_s3 }
  0x4a   : > { %v588_v30 = vld.sshfl [vmem:[#allocation1 + $0x10] sm:$0xff pattern:$0x75316420]  ;;  %v589_v31 = vld.sshfl [vmem:[#allocation1 + $0x18] sm:$0xff pattern:$0x75316420] }
  0x4b   : > { %v1174_v32 = vpack.i.bf16 %v589_v31, %v588_v30  ;;  %667 = vst [vmem:[#allocation1 + $0x10] ss:$2 sm:$0xff] %v1364_v1 }
  0x4c   : > { %v586_v33 = vld.sshfl [vmem:[#allocation1] sm:$0xff pattern:$0x75316420]  ;;  %v587_v34 = vld.sshfl [vmem:[#allocation1 + $0x8] sm:$0xff pattern:$0x75316420] }
  0x4d   : > { %665 = vst [vmem:[#allocation1] ss:$2 sm:$0xff] %v1366_v2  ;;  %v1164_v35 = vpack.i.bf16 %v587_v34, %v586_v33 }
  0x4f   : > { %1175 = vrot.lane.b32.xlu1 %v1174_v32, %s1279_s8  ;;  %1165 = vrot.lane.b32.xlu2 %v1164_v35, %s1279_s8  ;;  %s1211_s8 = scalar_lea.hbm %s1210_s7, 24 }
  0x50   : > { %p1212_p12 = scmp.ne.s32.totalorder %s1210_s7, %s1211_s8 }
  0x52   : > { %v670_v36 = vld.sshfl [vmem:[#allocation1 + $0x10] sm:$0xff pattern:$0x75316420]  ;;  %v671_v37 = vld.sshfl [vmem:[#allocation1 + $0x18] sm:$0xff pattern:$0x75316420]  ;;  %p1213_p13 = pnand %p1212_p12, %p1344_p4 }
  0x53   : > { %749 = vst [vmem:[#allocation1 + $0x10] ss:$2 sm:$0xff] %v1364_v1 }
  0x54   : > { %v668_v38 = vld.sshfl [vmem:[#allocation1] sm:$0xff pattern:$0x75316420]  ;;  %v669_v39 = vld.sshfl [vmem:[#allocation1 + $0x8] sm:$0xff pattern:$0x75316420]  ;;  %p1214_p0 = pneg %p1213_p13 }
  0x55   : > { %v1169_v40 = vpack.i.bf16 %v669_v39, %v668_v38  ;;  %747 = vst [vmem:[#allocation1] ss:$2 sm:$0xff] %v1366_v2 }
  0x57   : > { %1170 = vrot.lane.b32.xlu0 %v1169_v40, %s1280_s9  ;;  %682 = vrot.lane.b32.xlu1 %v671_v37, %s1280_s9 }
  0x58   : > { %680 = vrot.lane.b32.xlu2 %v670_v36, %s1280_s9 }
  0x5a   : > { %v752_v41 = vld.sshfl [vmem:[#allocation1 + $0x10] sm:$0xff pattern:$0x75316420]  ;;  %v753_v42 = vld.sshfl [vmem:[#allocation1 + $0x18] sm:$0xff pattern:$0x75316420] }
  0x5b   : > { %831 = vst [vmem:[#allocation1 + $0x10] ss:$2 sm:$0xff] %v1364_v1 }
  0x5c   : > { %v751_v43 = vld.sshfl [vmem:[#allocation1 + $0x8] sm:$0xff pattern:$0x75316420]  ;;  %v750_v44 = vld.sshfl [vmem:[#allocation1] sm:$0xff pattern:$0x75316420] }
  0x5d   : > { %v1179_v45 = vpack.i.bf16 %v752_v41, %v751_v43  ;;  %829 = vst [vmem:[#allocation1] ss:$2 sm:$0xff] %v1366_v2  ;;  %v1026_v43 = vld [vmem:[%s1583_s1 + $0x8] sm:$0xf] }
  0x5f   : > { %1180 = vrot.lane.b32.xlu0 %v1179_v45, %s1281_s10 }
  0x60   : > { %758 = vrot.lane.b32.xlu2 %v750_v44, %s1281_s10 }
  0x62   : > { %v834_v46 = vld.sshfl [vmem:[#allocation1 + $0x10] sm:$0xff pattern:$0x75316420]  ;;  %v835_v47 = vld.sshfl [vmem:[#allocation1 + $0x18] sm:$0xff pattern:$0x75316420] }
  0x63   : > { %v1184_v48 = vpack.i.bf16 %v835_v47, %v834_v46 }
  0x64   : > { %v832_v49 = vld.sshfl [vmem:[#allocation1] sm:$0xff pattern:$0x75316420]  ;;  %v833_v50 = vld.sshfl [vmem:[#allocation1 + $0x8] sm:$0xff pattern:$0x75316420] }
  0x65   : > { %1185 = vrot.lane.b32.xlu1 %v1184_v48, %s1282_s11  ;;  %v1189_v51 = vpack.i.bf16 %v833_v50, %v832_v49 }
  0x67   : > { %764 = vrot.lane.b32.xlu0 %v753_v42, %s1281_s10 }
  0x68   : > { %1190 = vrot.lane.b32.xlu2 %v1189_v51, %s1282_s11  ;;  %s1215_s11 = scalar_lea.hbm %s1585_s3, 48 }
  0x69   : > { %p1217_p2 = scmp.lt.s32.totalorder %s1215_s11, %s1211_s8 }
  0x6b   : > { %p1218_p3 = por %p1217_p2, %p1216_p1 }
  0x6d   : > { %p1219_p5 = pnand %p1218_p3, %p1214_p0 }
  0x99   : > { %v1146_v56 = vpop.permute.xlu2 %1145 }
  0x9a   : > { %v1148_v0 = vunpack.i.h.bf16 %v1146_v56  ;;  %v1147_v1 = vunpack.i.l.bf16 %v1146_v56 }
  0x9c   : > { %v440_v13 = vsel %vm438_vm3, %v1147_v1, %v1148_v0 }
  0x9d   : > { %v443_v21 = vpack.c.bf16 %v440_v13, %v440_v13 }
  0x9f   : > { %v1126_v58 = vpop.permute.xlu0 %1125  ;;  %v454_v31 = vsel %vm237_vm0, %v443_v21, 0 }
  0xa0   : > { %v1128_v59 = vunpack.i.h.bf16 %v1126_v58  ;;  %v1127_v60 = vunpack.i.l.bf16 %v1126_v58 }
  0xa1   : > { %v1151_v61 = vpop.permute.xlu2 %1150 }
  0xa2   : > { %v225_v62 = vsel %vm224_vm2, %v1127_v60, %v1128_v59  ;;  %v1152_v2 = vunpack.i.l.bf16 %v1151_v61  ;;  %v1153_v15 = vunpack.i.h.bf16 %v1151_v61 }
  0xa3   : > { %v230_v63 = vpack.c.bf16 %v225_v62, %v225_v62 }
  0xa4   : > { %v441_v12 = vsel %vm438_vm3, %v1152_v2, %v1147_v1  ;;  %v439_v28 = vsel %vm438_vm3, %v1148_v0, %v1153_v15 }
  0xa5   : > { %v245_v4 = vsel %vm237_vm0, %v230_v63, 0  ;;  %v442_v20 = vpack.c.bf16 %v441_v12, %v441_v12  ;;  %v444_v33 = vpack.c.bf16 %v439_v28, %v439_v28 }
  0xa6   : > { %280 = vmatpush.bf16.msra.mxu2 %v245_v4 }
  0xa7   : > { %v1131_v7 = vpop.permute.xlu0 %1130  ;;  %v451_v30 = vsel %vm237_vm0, %v442_v20, 0  ;;  %v457_v44 = vsel %vm237_vm0, %v444_v33, 0 }
  0xa8   : > { %v1133_v10 = vunpack.i.h.bf16 %v1131_v7  ;;  %v1132_v11 = vunpack.i.l.bf16 %v1131_v7 }
  0xa9   : > { %v1136_v14 = vpop.permute.xlu1 %1135  ;;  %1022 = vmatmul.msk.bf16.vlgmr.msra.gmra.mxu2 %vm233_vm1, %v1019_v6  ;;  %v1166_v34 = vpop.permute.xlu2 %1165 }
  0xaa   : > { %v1138_v16 = vunpack.i.h.bf16 %v1136_v14  ;;  %v1137_v17 = vunpack.i.l.bf16 %v1136_v14  ;;  %v227_v5 = vsel %vm224_vm2, %v1132_v11, %v1133_v10  ;;  %v226_v3 = vsel %vm224_vm2, %v1133_v10, %v1127_v60 }
  0xab   : > { %v228_v18 = vpack.c.bf16 %v227_v5, %v227_v5  ;;  %v229_v19 = vpack.c.bf16 %v226_v3, %v226_v3  ;;  %v1168_v37 = vunpack.i.h.bf16 %v1166_v34  ;;  %v1167_v38 = vunpack.i.l.bf16 %v1166_v34 }
  0xac   : > { %v359_v22 = vsel %vm356_vm4, %v1137_v17, %v1138_v16 }
  0xad   : > { %v239_v25 = vsel %vm237_vm0, %v228_v18, 0  ;;  %v242_v26 = vsel %vm237_vm0, %v229_v19, 0  ;;  %v360_v27 = vpack.c.bf16 %v359_v22, %v359_v22  ;;  %v605_v45 = vsel %vm602_vm5, %v1167_v38, %v1168_v37 }
  0xae   : > { %254 = vmatpush.bf16.msra.mxu0 %v239_v25  ;;  %267 = vmatpush.bf16.msra.mxu1 %v242_v26  ;;  %v606_v49 = vpack.c.bf16 %v605_v45, %v605_v45 }
  0xaf   : > { %v369_v29 = vsel %vm237_vm0, %v360_v27, 0 }
  0xb0   : > { %384 = vmatpush.bf16.msrb.mxu2 %v369_v29  ;;  %v615_v53 = vsel %vm237_vm0, %v606_v49, 0  ;;  %v1034_v29 = vld [vmem:[%s1583_s1 + $0x10] sm:$0xf] }
  0xb1   : > { %v1141_v32 = vpop.permute.xlu1 %1140  ;;  %1020 = vmatmul.msk.bf16.vlgmr.msra.gmra.mxu0 %vm233_vm1, %v1019_v6  ;;  %1021 = vmatmul.msk.bf16.vlgmr.msra.gmra.mxu1 %vm233_vm1, %v1019_v6 }
  0xb2   : > { %318 = vmatpush.bf16.msrb.mxu0 %v293_v23  ;;  %331 = vmatpush.bf16.msrb.mxu1 %v296_v24  ;;  %v1143_v35 = vunpack.i.h.bf16 %v1141_v32  ;;  %v1142_v36 = vunpack.i.l.bf16 %v1141_v32 }
  0xb4   : > { %479 = vmatpush.bf16.msra.mxu2 %v454_v31  ;;  %v358_v39 = vsel %vm356_vm4, %v1138_v16, %v1142_v36  ;;  %v357_v40 = vsel %vm356_vm4, %v1142_v36, %v1143_v35  ;;  %v1038_v31 = vld [vmem:[%s1583_s1 + $0x14] sm:$0xf] }
  0xb5   : > { %v361_v41 = vpack.c.bf16 %v358_v39, %v358_v39  ;;  %v362_v42 = vpack.c.bf16 %v357_v40, %v357_v40 }
  0xb6   : > { %466 = vmatpush.bf16.msra.mxu1 %v451_v30 }
  0xb7   : > { %v372_v46 = vsel %vm237_vm0, %v361_v41, 0  ;;  %v375_v47 = vsel %vm237_vm0, %v362_v42, 0  ;;  %v1156_v48 = vpop.permute.xlu0 %1155 }
  0xb8   : > { %397 = vmatpush.bf16.msrb.mxu3 %v372_v46  ;;  %410 = vmatpush.bf16.msra.mxu0 %v375_v47  ;;  %v1158_v50 = vunpack.i.h.bf16 %v1156_v48  ;;  %v1157_v51 = vunpack.i.l.bf16 %v1156_v48 }
  0xb9   : > { %1027 = vmatmul.msk.bf16.vlgmr.msrb.gmra.mxu2 %vm233_vm1, %v1026_v43  ;;  %v1161_v52 = vpop.permute.xlu1 %1160 }
  0xba   : > { %v1163_v55 = vunpack.i.h.bf16 %v1161_v52  ;;  %v1162_v56 = vunpack.i.l.bf16 %v1161_v52  ;;  %v521_v58 = vsel %vm520_vm6, %v1157_v51, %v1158_v50  ;;  %v1042_v50 = vld [vmem:[%s1583_s1 + $0x18] sm:$0xf] }
  0xbb   : > { %1028 = vmatmul.msk.bf16.vlgmr.msrb.gmra.mxu3 %vm233_vm1, %v1026_v43  ;;  %v526_v59 = vpack.c.bf16 %v521_v58, %v521_v58 }
  0xbc   : > { %492 = vmatpush.bf16.msra.mxu3 %v457_v44  ;;  %v522_v60 = vsel %vm520_vm6, %v1163_v55, %v1157_v51  ;;  %v523_v61 = vsel %vm520_vm6, %v1162_v56, %v1163_v55 }
  0xbd   : > { %v525_v62 = vpack.c.bf16 %v522_v60, %v522_v60  ;;  %v539_v63 = vsel %vm237_vm0, %v526_v59, 0  ;;  %v524_v0 = vpack.c.bf16 %v523_v61, %v523_v61  ;;  %v1283_v60 = vmov 0   ;;  %v1046_v61 = vld [vmem:[%s1583_s1 + $0x1c] sm:$0xf] }
  0xbe   : > { %574 = vmatpush.bf16.msrb.mxu2 %v539_v63  ;;  %1194 = vset.pattern.permute.xlu0 %v1283_v60  ;;  %v307_v63 = vpop.f32.mrf.mxu3 }
  0xbf   : > { %v536_v1 = vsel %vm237_vm0, %v525_v62, 0  ;;  %v533_v2 = vsel %vm237_vm0, %v524_v0, 0  ;;  %914 = vperm.xlu0 %1194, %v911_v57   ;;  %v1050_v62 = vld [vmem:[%s1583_s1 + $0x20] sm:$0xf] }
  0xc0   : > { %630 = vmatpush.bf16.msrb.mxu3 %v615_v53 }
  0xc1   : > { %1024 = vmatmul.msk.bf16.vlgmr.msrb.gmra.mxu0 %vm233_vm1, %v1398_v54  ;;  %1025 = vmatmul.msk.bf16.vlgmr.msrb.gmra.mxu1 %vm233_vm1, %v1398_v54  ;;  %v1176_v4 = vpop.permute.xlu1 %1175  ;;  %v681_v54 = vpop.permute.xlu2 %680 }
  0xc2   : > { %561 = vmatpush.bf16.msrb.mxu1 %v536_v1  ;;  %548 = vmatpush.bf16.msrb.mxu0 %v533_v2  ;;  %v1178_v6 = vunpack.i.h.bf16 %v1176_v4  ;;  %v1177_v7 = vunpack.i.l.bf16 %v1176_v4 }
  0xc4   : > { %v604_v9 = vsel %vm602_vm5, %v1168_v37, %v1177_v7  ;;  %v603_v10 = vsel %vm602_vm5, %v1177_v7, %v1178_v6 }
  0xc5   : > { %v607_v14 = vpack.c.bf16 %v604_v9, %v604_v9  ;;  %v608_v15 = vpack.c.bf16 %v603_v10, %v603_v10 }
  0xc6   : > { %v309_v0 = vpop.f32.mrf.mxu3 }
  0xc7   : > { %v618_v18 = vsel %vm237_vm0, %v607_v14, 0  ;;  %v621_v21 = vsel %vm237_vm0, %v608_v15, 0 }
  0xc9   : > { %1032 = vmatmul.msk.bf16.vlgmr.msra.gmra.mxu2 %vm233_vm1, %v1030_v8  ;;  %v1171_v11 = vpop.permute.xlu0 %1170  ;;  %v683_v23 = vpop.permute.xlu1 %682 }
  0xca   : > { %v1173_v12 = vunpack.i.h.bf16 %v1171_v11  ;;  %v1172_v13 = vunpack.i.l.bf16 %v1171_v11  ;;  %v759_v27 = vpop.permute.xlu2 %758  ;;  %v685_v32 = vsel %vm684_vm7, %v681_v54, %v683_v23 }
  0xcb   : > { %1033 = vmatmul.msk.bf16.vlgmr.msra.gmra.mxu3 %vm233_vm1, %v1030_v8  ;;  %v690_v37 = vpack.c.bf16 %v685_v32, %v685_v32 }
  0xcc   : > { %v686_v16 = vsel %vm684_vm7, %v1173_v12, %v681_v54  ;;  %v687_v17 = vsel %vm684_vm7, %v1172_v13, %v1173_v12 }
  0xcd   : > { %v689_v5 = vpack.c.bf16 %v686_v16, %v686_v16  ;;  %v688_v3 = vpack.c.bf16 %v687_v17, %v687_v17 }
  0xcf   : > { %v697_v19 = vsel %vm237_vm0, %v688_v3, 0  ;;  %v700_v20 = vsel %vm237_vm0, %v689_v5, 0 }
  0xd0   : > { %712 = vmatpush.bf16.msra.mxu2 %v697_v19  ;;  %725 = vmatpush.bf16.msra.mxu3 %v700_v20 }
  0xd1   : > { %1029 = vmatmul.msk.bf16.vlgmr.msra.gmra.mxu0 %vm233_vm1, %v1026_v43  ;;  %1031 = vmatmul.msk.bf16.vlgmr.msra.gmra.mxu1 %vm233_vm1, %v1030_v8  ;;  %v1181_v22 = vpop.permute.xlu0 %1180  ;;  %v703_v43 = vsel %vm237_vm0, %v690_v37, 0 }
  0xd2   : > { %643 = vmatpush.bf16.msra.mxu0 %v618_v18  ;;  %v1183_v24 = vunpack.i.h.bf16 %v1181_v22  ;;  %v1182_v25 = vunpack.i.l.bf16 %v1181_v22  ;;  %656 = vmatpush.bf16.msra.mxu1 %v621_v21  ;;  %v1191_v46 = vpop.permute.xlu2 %1190 }
  0xd3   : > { %v1193_v48 = vunpack.i.h.bf16 %v1191_v46  ;;  %v1192_v49 = vunpack.i.l.bf16 %v1191_v46 }
  0xd4   : > { %v768_v26 = vsel %vm766_vm8, %v1182_v25, %v1183_v24  ;;  %v769_v33 = vsel %vm766_vm8, %v759_v27, %v1182_v25 }
  0xd5   : > { %v771_v28 = vpack.c.bf16 %v768_v26, %v768_v26  ;;  %v770_v39 = vpack.c.bf16 %v769_v33, %v769_v33  ;;  %v851_v53 = vsel %vm848_vm9, %v1192_v49, %v1193_v48 }
  0xd6   : > { %v852_v56 = vpack.c.bf16 %v851_v53, %v851_v53 }
  0xd7   : > { %v782_v30 = vsel %vm237_vm0, %v771_v28, 0  ;;  %v1186_v35 = vpop.permute.xlu1 %1185  ;;  %v779_v44 = vsel %vm237_vm0, %v770_v39, 0 }
  0xd8   : > { %v1188_v40 = vunpack.i.h.bf16 %v1186_v35  ;;  %v1187_v41 = vunpack.i.l.bf16 %v1186_v35  ;;  %v861_v59 = vsel %vm237_vm0, %v852_v56, 0 }
  0xd9   : > { %1037 = vmatmul.msk.bf16.vlgmr.msrb.gmra.mxu2 %vm233_vm1, %v1034_v29  ;;  %v765_v34 = vpop.permute.xlu0 %764 }
  0xda   : > { %v767_v36 = vsel %vm766_vm8, %v1183_v24, %v765_v34  ;;  %807 = vmatpush.bf16.msrb.mxu2 %v782_v30  ;;  %v849_v45 = vsel %vm848_vm9, %v1187_v41, %v1188_v40  ;;  %v850_v52 = vsel %vm848_vm9, %v1193_v48, %v1187_v41 }
  0xdb   : > { %1039 = vmatmul.msk.bf16.vlgmr.msrb.gmra.mxu3 %vm233_vm1, %v1038_v31  ;;  %v772_v38 = vpack.c.bf16 %v767_v36, %v767_v36  ;;  %v854_v47 = vpack.c.bf16 %v849_v45, %v849_v45  ;;  %v853_v55 = vpack.c.bf16 %v850_v52, %v850_v52 }
  0xdd   : > { %v785_v42 = vsel %vm237_vm0, %v772_v38, 0  ;;  %v867_v51 = vsel %vm237_vm0, %v854_v47, 0  ;;  %v864_v58 = vsel %vm237_vm0, %v853_v55, 0 }
  0xde   : > { %820 = vmatpush.bf16.msrb.mxu3 %v785_v42 }
  0xe1   : > { %1035 = vmatmul.msk.bf16.vlgmr.msrb.gmra.mxu0 %vm233_vm1, %v1034_v29  ;;  %1036 = vmatmul.msk.bf16.vlgmr.msrb.gmra.mxu1 %vm233_vm1, %v1034_v29 }
  0xe2   : > { %738 = vmatpush.bf16.msrb.mxu0 %v703_v43  ;;  %794 = vmatpush.bf16.msrb.mxu1 %v779_v44 }
  0xe9   : > { %1043 = vmatmul.msk.bf16.vlgmr.msra.gmra.mxu2 %vm233_vm1, %v1042_v50 }
  0xea   : > { %902 = vmatpush.bf16.msra.mxu2 %v867_v51 }
  0xeb   : > { %1044 = vmatmul.msk.bf16.vlgmr.msra.gmra.mxu3 %vm233_vm1, %v1042_v50 }
  0xf1   : > { %1040 = vmatmul.msk.bf16.vlgmr.msra.gmra.mxu0 %vm233_vm1, %v1038_v31  ;;  %1041 = vmatmul.msk.bf16.vlgmr.msra.gmra.mxu1 %vm233_vm1, %v1038_v31 }
  0xf2   : > { %889 = vmatpush.bf16.msra.mxu1 %v864_v58  ;;  %876 = vmatpush.bf16.msra.mxu0 %v861_v59 }
  0xf9   : > { %1048 = vmatmul.msk.bf16.vlgmr.msrb.gmra.mxu2 %vm233_vm1, %v1046_v61 }
  0xfb   : > { %1049 = vmatmul.msk.bf16.vlgmr.msrb.gmra.mxu3 %vm233_vm1, %v1046_v61 }
 0x101   : > { %1045 = vmatmul.msk.bf16.vlgmr.msrb.gmra.mxu0 %vm233_vm1, %v1042_v50  ;;  %1047 = vmatmul.msk.bf16.vlgmr.msrb.gmra.mxu1 %vm233_vm1, %v1046_v61 }
 0x109   : > { %1053 = vmatmul.msk.bf16.vlgmr.msra.gmra.mxu2 %vm233_vm1, %v1050_v62 }
 0x111   : > { %1051 = vmatmul.msk.bf16.vlgmr.msra.gmra.mxu0 %vm233_vm1, %v1050_v62  ;;  %1052 = vmatmul.msk.bf16.vlgmr.msra.gmra.mxu1 %vm233_vm1, %v1050_v62 }
 0x12c   : > { %v282_v1 = vpop.f32.mrf.mxu2 }
 0x12e   : > { %v256_v2 = vpop.f32.mrf.mxu0  ;;  %v269_v4 = vpop.f32.mrf.mxu1 }
 0x12f   : > { %v308_v6 = vadd.f32 %v307_v63, %v256_v2 }
 0x134   : > { %v284_v7 = vpop.f32.mrf.mxu2 }
 0x136   : > { %v258_v8 = vpop.f32.mrf.mxu0  ;;  %v271_v9 = vpop.f32.mrf.mxu1 }
 0x13c   : > { %v386_v10 = vpop.f32.mrf.mxu2 }
 0x13d   : > { %v416_v11 = vadd.f32 %v386_v10, %v308_v6 }
 0x13e   : > { %v320_v54 = vpop.f32.mrf.mxu0  ;;  %v333_v12 = vpop.f32.mrf.mxu1 }
 0x13f   : > { %v321_v13 = vadd.f32 %v320_v54, %v269_v4  ;;  %v334_v14 = vadd.f32 %v333_v12, %v282_v1  ;;  %v399_v15 = vpop.f32.mrf.mxu3  ;;  %v915_v4 = vpop.permute.xlu0 %914 }
 0x141   : > { %v417_v16 = vadd.f32 %v399_v15, %v321_v13 }
 0x144   : > { %v388_v17 = vpop.f32.mrf.mxu2 }
 0x146   : > { %v322_v5 = vpop.f32.mrf.mxu0  ;;  %v335_v3 = vpop.f32.mrf.mxu1 }
 0x147   : > { %v401_v18 = vpop.f32.mrf.mxu3 }
 0x14c   : > { %v481_v19 = vpop.f32.mrf.mxu2 }
 0x14d   : > { %v499_v49 = vadd.f32 %v481_v19, %v417_v16 }
 0x14e   : > { %v412_v20 = vpop.f32.mrf.mxu0  ;;  %v468_v21 = vpop.f32.mrf.mxu1 }
 0x14f   : > { %v494_v22 = vpop.f32.mrf.mxu3  ;;  %v418_v44 = vadd.f32 %v412_v20, %v334_v14  ;;  %v498_v50 = vadd.f32 %v468_v21, %v416_v11 }
 0x151   : > { %v500_v48 = vadd.f32 %v494_v22, %v418_v44 }
 0x154   : > { %v483_v23 = vpop.f32.mrf.mxu2 }
 0x156   : > { %v414_v24 = vpop.f32.mrf.mxu0  ;;  %v470_v25 = vpop.f32.mrf.mxu1 }
 0x157   : > { %v496_v26 = vpop.f32.mrf.mxu3 }
 0x15c   : > { %v576_v27 = vpop.f32.mrf.mxu2 }
 0x15d   : > { %v582_v51 = vadd.f32 %v576_v27, %v500_v48 }
 0x15e   : > { %v550_v28 = vpop.f32.mrf.mxu0  ;;  %v563_v29 = vpop.f32.mrf.mxu1 }
 0x15f   : > { %v632_v30 = vpop.f32.mrf.mxu3  ;;  %v580_v53 = vadd.f32 %v550_v28, %v498_v50  ;;  %v581_v55 = vadd.f32 %v563_v29, %v499_v49 }
 0x161   : > { %v662_v62 = vadd.f32 %v632_v30, %v580_v53 }
 0x164   : > { %v578_v31 = vpop.f32.mrf.mxu2 }
 0x166   : > { %v552_v32 = vpop.f32.mrf.mxu0  ;;  %v565_v33 = vpop.f32.mrf.mxu1 }
 0x167   : > { %v634_v34 = vpop.f32.mrf.mxu3 }
 0x16c   : > { %v714_v35 = vpop.f32.mrf.mxu2 }
 0x16d   : > { %v744_v63 = vadd.f32 %v714_v35, %v662_v62 }
 0x16e   : > { %v645_v36 = vpop.f32.mrf.mxu0  ;;  %v658_v37 = vpop.f32.mrf.mxu1 }
 0x16f   : > { %v727_v38 = vpop.f32.mrf.mxu3  ;;  %v664_v56 = vadd.f32 %v658_v37, %v582_v51  ;;  %v663_v57 = vadd.f32 %v645_v36, %v581_v55 }
 0x171   : > { %v745_v0 = vadd.f32 %v727_v38, %v663_v57 }
 0x174   : > { %v716_v39 = vpop.f32.mrf.mxu2 }
 0x176   : > { %v647_v40 = vpop.f32.mrf.mxu0  ;;  %v660_v41 = vpop.f32.mrf.mxu1 }
 0x177   : > { %v729_v42 = vpop.f32.mrf.mxu3 }
 0x17c   : > { %v809_v43 = vpop.f32.mrf.mxu2 }
 0x17d   : > { %v827_v6 = vadd.f32 %v809_v43, %v745_v0 }
 0x17e   : > { %v740_v45 = vpop.f32.mrf.mxu0  ;;  %v796_v46 = vpop.f32.mrf.mxu1 }
 0x17f   : > { %v822_v47 = vpop.f32.mrf.mxu3  ;;  %v746_v60 = vadd.f32 %v740_v45, %v664_v56  ;;  %v826_v7 = vadd.f32 %v796_v46, %v744_v63 }
 0x181   : > { %v828_v1 = vadd.f32 %v822_v47, %v746_v60 }
 0x184   : > { %v811_v52 = vpop.f32.mrf.mxu2 }
 0x186   : > { %v742_v58 = vpop.f32.mrf.mxu0  ;;  %v798_v59 = vpop.f32.mrf.mxu1 }
 0x187   : > { %v824_v61 = vpop.f32.mrf.mxu3 }
 0x18c   : > { %v904_v2 = vpop.f32.mrf.mxu2 }
 0x18d   : > { %v910_v8 = vadd.f32 %v904_v2, %v828_v1 }
 0x18e   : > { %v878_v9 = vpop.f32.mrf.mxu0  ;;  %v891_v10 = vpop.f32.mrf.mxu1 }
 0x18f   : > { %v919_v11 = vadd.f32 %v915_v4, %v910_v8  ;;  %v908_v54 = vadd.f32 %v878_v9, %v826_v7  ;;  %v909_v12 = vadd.f32 %v891_v10, %v827_v6 }
 0x191   : > { %922 = vst [vmem:[%s177_s15 + $0x10] sm:$0xff] %v919_v11  ;;  %v917_v13 = vadd.f32 %v915_v4, %v908_v54  ;;  %v918_v14 = vadd.f32 %v915_v4, %v909_v12 }
 0x193   : > { %920 = vst [vmem:[%s177_s15] sm:$0xff] %v917_v13 }
 0x194   : > { %921 = vst [vmem:[%s177_s15 + $0x8] sm:$0xff] %v918_v14  ;;  %v906_v15 = vpop.f32.mrf.mxu2 }
 0x195   : > { %1222 = shalt.err (!%p1219_p5)
}
 0x196   : > { %1060 = dma.vmem_to_hbm [thread:$0]  (%p1344_p4), %s940_s4, 384, %s942_s5, %s924_s6   ;;  %v880_v16 = vpop.f32.mrf.mxu0  ;;  %v893_v17 = vpop.f32.mrf.mxu1 }
 0x197 PF: > { %p1066_p6 = scmp.ge.s32.totalorder %s1273_s17, 2  ;;  %s953_s21 = sand.u32 1, %s1253_s12  }
 0x198   : > { %s954_s23 = scalar_lea.sflag [#allocation3], %s953_s21 }
 0x199   : > { %p1063_p7 = pnand %p1066_p6, %p1351_p8 }
 0x19b   : > { %p1064_p9 = pneg %p1063_p7 }
 0x19d   : > { %1248 = dma.done.wait (%p1064_p9), %s954_s23, 384  }
 0x19e   : > { %1250 = vsyncadd (%p1064_p9), %s954_s23, 4294966912  ;;  %s16_s17 = sadd.s32 1, %s1273_s17   ;;  %s1588_s12 = smov %s1257_s13 }
 0x19f   : > { %p13_p10 = scmp.ge.s32.totalorder %s16_s17, 4   ;;  %s1589_s13 = smov %s1261_s14 }
 0x1a0   : > { %s1590_s14 = smov %s1357_s25  ;;  %s1591_s15 = smov %s1269_s16 }
 0x1a1   : > { %s1592_s16 = smov %s1594_s20  ;;  %15 = sbr.rel (!%p13_p10) target bundleno = 4 (0x4), region = 84 }
 0x1a6   :  { %960 = vsyncpa [#allocation3], 1 }
 0x1a7   :  { %962 = vsyncpa [#allocation3 + $0x1], 1 }

// kernel: tpu_custom_call.1
= control target key start
LH: loop header
LB: loop body
LE: loop exit
PB: predicated region body
PF: predicated region fallthrough
CT: control target
= control target key end

     0   :  { %8 = vsyncpa [#allocation3], 0  ;;  %s1582_s0 = inlined_call_operand.vmem [shape: bf16[2,4,512], index: 0, kind: input, shape index: {}]   ;;  %s1583_s1 = inlined_call_operand.vmem [shape: bf16[3,3,8,4], index: 1, kind: input, shape index: {}]   ;;  %s1584_s2 = inlined_call_operand.vmem [shape: f32[8,1], index: 2, kind: input, shape index: {}]   ;;  %s1585_s3 = inlined_call_operand.hbm [shape: f32[2,8,384], index: 3, kind: output, shape index: {}]  }
   0x1   :  { %10 = vsyncpa [#allocation3 + $0x1], 0  ;;  %s1304_s12 = smov 0   ;;  %s1306_s13 = smov 0  }
   0x2   :  { %s1308_s14 = smov 0   ;;  %s1310_s15 = smov 0  }
   0x3   :  { %s1312_s16 = smov 0   ;;  %s1314_s17 = smov 0  }
   0x4 LB: > { %s1012_s18 = sadd.s32 4294967295, %s1273_s17   ;;  %s1013_s19 = sadd.s32 4294967294, %s1273_s17   ;;  %s1273_s17 = sphi %s1314_s17, %s16_s17   ;;  %s1269_s16 = sphi %s1312_s16, %s1592_s16   ;;  %s1265_s15 = sphi %s1310_s15, %s1591_s15   ;;  %s1261_s14 = sphi %s1308_s14, %s1590_s14   ;;  %s1257_s13 = sphi %s1306_s13, %s1589_s13   ;;  %s1253_s12 = sphi %s1304_s12, %s1588_s12  }
   0x5   : > { %s28_s20 = sadd.s32 1, %s1269_s16  ;;  %s105_s21 = sadd.s32 1, %s1261_s14 }
   0x6   : > { %p30_p0 = scmp.ge.s32.totalorder %s28_s20, 2  ;;  %p115_p1 = scmp.ne.s32.totalorder %s1261_s14, %s1257_s13 }
   0x7   : > { %p116_p2 = scmp.eq.s32.totalorder %s1012_s18, 1  ;;  %p121_p3 = scmp.ne.s32.totalorder %s1257_s13, %s1253_s12 }
   0x8   : > { %s1594_s20 = smov (%p30_p0, %s28_s20), 0  ;;  %p122_p5 = scmp.eq.s32.totalorder %s1013_s19, 1 }
   0x9   : > { %p1344_p4 = por %p116_p2, %p115_p1  ;;  %s100_s23 = ssub.s32 %s1269_s16, %s1594_s20 }
   0xa   : > { %p1016_p6 = scmp.ge.s32.totalorder %s1273_s17, 1  ;;  %p103_p7 = scmp.eq.s32.totalorder %s100_s23, 0 }
   0xb   : > { %p1351_p8 = por %p122_p5, %p121_p3  ;;  %p154_p9 = scmp.lt.s32.totalorder %s1273_s17, 3 }
   0xc   : > { %s1357_s25 = scalar_select %p103_p7, %s1261_s14, %s105_s21  }
   0xd   : > { %p155_p10 = pnand %p1016_p6, %p154_p9 }
   0xe   : > { %p178_p11 = scmp.lt.s32.totalorder (!%p155_p10), %s1265_s15, 1  ;;  %s1275_s4 = smov (!%p155_p10), 127  }
   0xf   : > { %158 = sbr.rel (%p155_p10) target bundleno = 407 (0x197), region = 32  ;;  %s1276_s5 = smov (!%p155_p10), 126  }
  0x10   : > { %s1277_s6 = smov (!%p155_p10), 110   ;;  %s1278_s7 = smov (!%p155_p10), 109  }
  0x11   : > { %s1279_s8 = smov (!%p155_p10), 108   ;;  %s1280_s9 = smov (!%p155_p10), 92  }
  0x12   : > { %s1281_s10 = smov (!%p155_p10), 91   ;;  %s1282_s11 = smov (!%p155_p10), 90  }
  0x13   : > { %s175_s23 = sand.u32 (!%p155_p10), 1, %s1257_s13  }
  0x14   : > { %s179_s26 = scalar_select %p178_p11, %s1265_s15, 1  ;;  %vm237_vm0 = vcmask 1041408   ;;  %vm233_vm1 = vcmask 31744   ;;  %v1398_v54 = vld [vmem:[%s1583_s1] sm:$0xf]  ;;  %v222_v55 = vlaneseq }
  0x16   : > { %s1057_s27 = sshll.u32 %s179_s26, 3  ;;  %v1402_v57 = vand.u32 127, %v222_v55  ;;  %s1059_s26 = smul.u32 24, %s1265_s15 }
  0x17   : > { %s182_s30 = scalar_lea.vmem %s1582_s0, %s1057_s27  ;;  %s1058_s27 = smul.u32 24, %s175_s23 }
  0x18   : > { %v185_v0 = vld [vmem:[%s182_s30] sm:$0xff]  ;;  %vm224_vm2 = vcmp.lt.s32.totalorder %v1402_v57, 127  ;;  %vm438_vm3 = vcmp.lt.s32.totalorder %v1402_v57, 110  ;;  %vm356_vm4 = vcmp.lt.s32.totalorder %v1402_v57, 126  ;;  %vm602_vm5 = vcmp.lt.s32.totalorder %v1402_v57, 108  ;;  %s937_s30 = scalar_lea.hbm %s1585_s3, %s1059_s26 }
  0x19   : > { %v1364_v1 = vunpack.c.h.bf16 %v185_v0  ;;  %v1366_v2 = vunpack.c.l.bf16 %v185_v0  ;;  %vm520_vm6 = vcmp.lt.s32.totalorder %v1402_v57, 109  ;;  %vm684_vm7 = vcmp.lt.s32.totalorder %v1402_v57, 92  ;;  %s177_s15 = scalar_lea.vmem [#allocation2], %s1058_s27 }
  0x1a   : > { %vm766_vm8 = vcmp.lt.s32.totalorder %v1402_v57, 91  ;;  %vm848_vm9 = vcmp.lt.s32.totalorder %v1402_v57, 90  ;;  %v911_v57 = vld [vmem:[%s1584_s2] sm:$0xff] }
  0x1b   : > { %192 = vst [vmem:[#allocation1 + $0x10] ss:$2 sm:$0xff] %v1364_v1 }
  0x1c   : > { %190 = vst [vmem:[#allocation1] ss:$2 sm:$0xff] %v1366_v2 }
  0x22   : > { %v1370_v3 = vld.sshfl [vmem:[#allocation1 + $0x10] sm:$0xff pattern:$0x75316420] }
  0x23   : > { %205 = vst [vmem:[#allocation1 + $0x10] ss:$2 sm:$0xff] %v1364_v1  ;;  %v1373_v4 = vld.sshfl [vmem:[#allocation1] sm:$0xff pattern:$0x75316420] }
  0x24   : > { %v1375_v5 = vld.sshfl [vmem:[#allocation1 + $0x8] sm:$0xff pattern:$0x75316420]  ;;  %v199_v52 = vpack.c.bf16 %v1373_v4, %v1373_v4 }
  0x25   : > { %203 = vst [vmem:[#allocation1] ss:$2 sm:$0xff] %v1366_v2 }
  0x26   : > { %v290_v53 = vsel %vm237_vm0, %v199_v52, 0 }
  0x27   : > { %305 = vmatpush.bf16.msra.mxu3 %v290_v53 }
  0x2a   : > { %v208_v6 = vld.sshfl [vmem:[#allocation1 + $0x10] sm:$0xff pattern:$0x75316420]  ;;  %v209_v7 = vld.sshfl [vmem:[#allocation1 + $0x18] sm:$0xff pattern:$0x75316420]  ;;  %1023 = vmatmul.msk.bf16.vlgmr.msra.gmra.mxu3 %vm233_vm1, %v1398_v54 }
  0x2b   : > { %v1124_v8 = vpack.i.bf16 %v209_v7, %v208_v6  ;;  %339 = vst [vmem:[#allocation1 + $0x10] ss:$2 sm:$0xff] %v1364_v1  ;;  %v1019_v6 = vld [vmem:[%s1583_s1 + $0x4] sm:$0xf] }
  0x2c   : > { %v206_v9 = vld.sshfl [vmem:[#allocation1] sm:$0xff pattern:$0x75316420]  ;;  %v207_v10 = vld.sshfl [vmem:[#allocation1 + $0x8] sm:$0xff pattern:$0x75316420] }
  0x2d   : > { %1125 = vrot.lane.b32.xlu0 %v1124_v8, %s1275_s4  ;;  %337 = vst [vmem:[#allocation1] ss:$2 sm:$0xff] %v1366_v2  ;;  %v1129_v11 = vpack.i.bf16 %v207_v10, %v206_v9  ;;  %v200_v8 = vpack.c.bf16 %v1375_v5, %v1375_v5  ;;  %v201_v9 = vpack.c.bf16 %v1370_v3, %v1370_v3 }
  0x32   : > { %v342_v12 = vld.sshfl [vmem:[#allocation1 + $0x10] sm:$0xff pattern:$0x75316420]  ;;  %v343_v13 = vld.sshfl [vmem:[#allocation1 + $0x18] sm:$0xff pattern:$0x75316420] }
  0x33   : > { %421 = vst [vmem:[#allocation1 + $0x10] ss:$2 sm:$0xff] %v1364_v1  ;;  %v1139_v19 = vpack.i.bf16 %v343_v13, %v342_v12 }
  0x34   : > { %v340_v14 = vld.sshfl [vmem:[#allocation1] sm:$0xff pattern:$0x75316420]  ;;  %v341_v15 = vld.sshfl [vmem:[#allocation1 + $0x8] sm:$0xff pattern:$0x75316420] }
  0x35   : > { %1130 = vrot.lane.b32.xlu0 %v1129_v11, %s1275_s4  ;;  %v1134_v16 = vpack.i.bf16 %v341_v15, %v340_v14  ;;  %419 = vst [vmem:[#allocation1] ss:$2 sm:$0xff] %v1366_v2  ;;  %s939_s4 = sshll.u32 %s177_s15, 4  ;;  %s940_s4 = int_to_ptr.vmem [resolvable:$true] %s939_s4 }
  0x37   : > { %1135 = vrot.lane.b32.xlu1 %v1134_v16, %s1276_s5 }
  0x3a   : > { %v424_v17 = vld.sshfl [vmem:[#allocation1 + $0x10] sm:$0xff pattern:$0x75316420]  ;;  %v425_v18 = vld.sshfl [vmem:[#allocation1 + $0x18] sm:$0xff pattern:$0x75316420] }
  0x3b   : > { %503 = vst [vmem:[#allocation1 + $0x10] ss:$2 sm:$0xff] %v1364_v1 }
  0x3c   : > { %v423_v20 = vld.sshfl [vmem:[#allocation1 + $0x8] sm:$0xff pattern:$0x75316420]  ;;  %v422_v21 = vld.sshfl [vmem:[#allocation1] sm:$0xff pattern:$0x75316420] }
  0x3d   : > { %v1144_v22 = vpack.i.bf16 %v424_v17, %v423_v20  ;;  %501 = vst [vmem:[#allocation1] ss:$2 sm:$0xff] %v1366_v2  ;;  %v1149_v26 = vpack.i.bf16 %v425_v18, %v422_v21 }
  0x3f   : > { %1140 = vrot.lane.b32.xlu1 %v1139_v19, %s1276_s5  ;;  %1145 = vrot.lane.b32.xlu2 %v1144_v22, %s1277_s6  ;;  %s941_s5 = sshll.u32 %s937_s30, 4  ;;  %s942_s5 = int_to_ptr.hbm [resolvable:$true] %s941_s5 }
  0x42   : > { %v506_v23 = vld.sshfl [vmem:[#allocation1 + $0x10] sm:$0xff pattern:$0x75316420]  ;;  %v507_v24 = vld.sshfl [vmem:[#allocation1 + $0x18] sm:$0xff pattern:$0x75316420] }
  0x43   : > { %v1154_v25 = vpack.i.bf16 %v507_v24, %v506_v23  ;;  %585 = vst [vmem:[#allocation1 + $0x10] ss:$2 sm:$0xff] %v1364_v1  ;;  %v293_v23 = vsel %vm237_vm0, %v200_v8, 0  ;;  %v296_v24 = vsel %vm237_vm0, %v201_v9, 0  ;;  %v1030_v8 = vld [vmem:[%s1583_s1 + $0xc] sm:$0xf] }
  0x44   : > { %v504_v27 = vld.sshfl [vmem:[#allocation1] sm:$0xff pattern:$0x75316420]  ;;  %v505_v28 = vld.sshfl [vmem:[#allocation1 + $0x8] sm:$0xff pattern:$0x75316420] }
  0x45   : > { %1155 = vrot.lane.b32.xlu0 %v1154_v25, %s1278_s7  ;;  %v1159_v29 = vpack.i.bf16 %v505_v28, %v504_v27  ;;  %583 = vst [vmem:[#allocation1] ss:$2 sm:$0xff] %v1366_v2 }
  0x47   : > { %1160 = vrot.lane.b32.xlu1 %v1159_v29, %s1278_s7  ;;  %1150 = vrot.lane.b32.xlu2 %v1149_v26, %s1277_s6  ;;  %s924_s6 = scalar_lea.sflag [#allocation3], %s175_s23  ;;  %s1209_s7 = sshra.s32 %s942_s5, 4  ;;  %s1210_s7 = int_to_ptr.hbm [resolvable:$true] %s1209_s7 }
  0x48   : > { %p1216_p1 = scmp.lt.s32.totalorder %s1210_s7, %s1585_s3 }
  0x4a   : > { %v588_v30 = vld.sshfl [vmem:[#allocation1 + $0x10] sm:$0xff pattern:$0x75316420]  ;;  %v589_v31 = vld.sshfl [vmem:[#allocation1 + $0x18] sm:$0xff pattern:$0x75316420] }
  0x4b   : > { %v1174_v32 = vpack.i.bf16 %v589_v31, %v588_v30  ;;  %667 = vst [vmem:[#allocation1 + $0x10] ss:$2 sm:$0xff] %v1364_v1 }
  0x4c   : > { %v586_v33 = vld.sshfl [vmem:[#allocation1] sm:$0xff pattern:$0x75316420]  ;;  %v587_v34 = vld.sshfl [vmem:[#allocation1 + $0x8] sm:$0xff pattern:$0x75316420] }
  0x4d   : > { %665 = vst [vmem:[#allocation1] ss:$2 sm:$0xff] %v1366_v2  ;;  %v1164_v35 = vpack.i.bf16 %v587_v34, %v586_v33 }
  0x4f   : > { %1175 = vrot.lane.b32.xlu1 %v1174_v32, %s1279_s8  ;;  %1165 = vrot.lane.b32.xlu2 %v1164_v35, %s1279_s8  ;;  %s1211_s8 = scalar_lea.hbm %s1210_s7, 24 }
  0x50   : > { %p1212_p12 = scmp.ne.s32.totalorder %s1210_s7, %s1211_s8 }
  0x52   : > { %v670_v36 = vld.sshfl [vmem:[#allocation1 + $0x10] sm:$0xff pattern:$0x75316420]  ;;  %v671_v37 = vld.sshfl [vmem:[#allocation1 + $0x18] sm:$0xff pattern:$0x75316420]  ;;  %p1213_p13 = pnand %p1212_p12, %p1344_p4 }
  0x53   : > { %749 = vst [vmem:[#allocation1 + $0x10] ss:$2 sm:$0xff] %v1364_v1 }
  0x54   : > { %v668_v38 = vld.sshfl [vmem:[#allocation1] sm:$0xff pattern:$0x75316420]  ;;  %v669_v39 = vld.sshfl [vmem:[#allocation1 + $0x8] sm:$0xff pattern:$0x75316420]  ;;  %p1214_p0 = pneg %p1213_p13 }
  0x55   : > { %v1169_v40 = vpack.i.bf16 %v669_v39, %v668_v38  ;;  %747 = vst [vmem:[#allocation1] ss:$2 sm:$0xff] %v1366_v2 }
  0x57   : > { %1170 = vrot.lane.b32.xlu0 %v1169_v40, %s1280_s9  ;;  %682 = vrot.lane.b32.xlu1 %v671_v37, %s1280_s9 }
  0x58   : > { %680 = vrot.lane.b32.xlu2 %v670_v36, %s1280_s9 }
  0x5a   : > { %v752_v41 = vld.sshfl [vmem:[#allocation1 + $0x10] sm:$0xff pattern:$0x75316420]  ;;  %v753_v42 = vld.sshfl [vmem:[#allocation1 + $0x18] sm:$0xff pattern:$0x75316420] }
  0x5b   : > { %831 = vst [vmem:[#allocation1 + $0x10] ss:$2 sm:$0xff] %v1364_v1 }
  0x5c   : > { %v751_v43 = vld.sshfl [vmem:[#allocation1 + $0x8] sm:$0xff pattern:$0x75316420]  ;;  %v750_v44 = vld.sshfl [vmem:[#allocation1] sm:$0xff pattern:$0x75316420] }
  0x5d   : > { %v1179_v45 = vpack.i.bf16 %v752_v41, %v751_v43  ;;  %829 = vst [vmem:[#allocation1] ss:$2 sm:$0xff] %v1366_v2  ;;  %v1026_v43 = vld [vmem:[%s1583_s1 + $0x8] sm:$0xf] }
  0x5f   : > { %1180 = vrot.lane.b32.xlu0 %v1179_v45, %s1281_s10 }
  0x60   : > { %758 = vrot.lane.b32.xlu2 %v750_v44, %s1281_s10 }
  0x62   : > { %v834_v46 = vld.sshfl [vmem:[#allocation1 + $0x10] sm:$0xff pattern:$0x75316420]  ;;  %v835_v47 = vld.sshfl [vmem:[#allocation1 + $0x18] sm:$0xff pattern:$0x75316420] }
  0x63   : > { %v1184_v48 = vpack.i.bf16 %v835_v47, %v834_v46 }
  0x64   : > { %v832_v49 = vld.sshfl [vmem:[#allocation1] sm:$0xff pattern:$0x75316420]  ;;  %v833_v50 = vld.sshfl [vmem:[#allocation1 + $0x8] sm:$0xff pattern:$0x75316420] }
  0x65   : > { %1185 = vrot.lane.b32.xlu1 %v1184_v48, %s1282_s11  ;;  %v1189_v51 = vpack.i.bf16 %v833_v50, %v832_v49 }
  0x67   : > { %764 = vrot.lane.b32.xlu0 %v753_v42, %s1281_s10 }
  0x68   : > { %1190 = vrot.lane.b32.xlu2 %v1189_v51, %s1282_s11  ;;  %s1215_s11 = scalar_lea.hbm %s1585_s3, 48 }
  0x69   : > { %p1217_p2 = scmp.lt.s32.totalorder %s1215_s11, %s1211_s8 }
  0x6b   : > { %p1218_p3 = por %p1217_p2, %p1216_p1 }
  0x6d   : > { %p1219_p5 = pnand %p1218_p3, %p1214_p0 }
  0x99   : > { %v1146_v56 = vpop.permute.xlu2 %1145 }
  0x9a   : > { %v1148_v0 = vunpack.i.h.bf16 %v1146_v56  ;;  %v1147_v1 = vunpack.i.l.bf16 %v1146_v56 }
  0x9c   : > { %v440_v13 = vsel %vm438_vm3, %v1147_v1, %v1148_v0 }
  0x9d   : > { %v443_v21 = vpack.c.bf16 %v440_v13, %v440_v13 }
  0x9f   : > { %v1126_v58 = vpop.permute.xlu0 %1125  ;;  %v454_v31 = vsel %vm237_vm0, %v443_v21, 0 }
  0xa0   : > { %v1128_v59 = vunpack.i.h.bf16 %v1126_v58  ;;  %v1127_v60 = vunpack.i.l.bf16 %v1126_v58 }
  0xa1   : > { %v1151_v61 = vpop.permute.xlu2 %1150 }
  0xa2   : > { %v225_v62 = vsel %vm224_vm2, %v1127_v60, %v1128_v59  ;;  %v1152_v2 = vunpack.i.l.bf16 %v1151_v61  ;;  %v1153_v15 = vunpack.i.h.bf16 %v1151_v61 }
  0xa3   : > { %v230_v63 = vpack.c.bf16 %v225_v62, %v225_v62 }
  0xa4   : > { %v441_v12 = vsel %vm438_vm3, %v1152_v2, %v1147_v1  ;;  %v439_v28 = vsel %vm438_vm3, %v1148_v0, %v1153_v15 }
  0xa5   : > { %v245_v4 = vsel %vm237_vm0, %v230_v63, 0  ;;  %v442_v20 = vpack.c.bf16 %v441_v12, %v441_v12  ;;  %v444_v33 = vpack.c.bf16 %v439_v28, %v439_v28 }
  0xa6   : > { %280 = vmatpush.bf16.msra.mxu2 %v245_v4 }
  0xa7   : > { %v1131_v7 = vpop.permute.xlu0 %1130  ;;  %v451_v30 = vsel %vm237_vm0, %v442_v20, 0  ;;  %v457_v44 = vsel %vm237_vm0, %v444_v33, 0 }
  0xa8   : > { %v1133_v10 = vunpack.i.h.bf16 %v1131_v7  ;;  %v1132_v11 = vunpack.i.l.bf16 %v1131_v7 }
  0xa9   : > { %v1136_v14 = vpop.permute.xlu1 %1135  ;;  %1022 = vmatmul.msk.bf16.vlgmr.msra.gmra.mxu2 %vm233_vm1, %v1019_v6  ;;  %v1166_v34 = vpop.permute.xlu2 %1165 }
  0xaa   : > { %v1138_v16 = vunpack.i.h.bf16 %v1136_v14  ;;  %v1137_v17 = vunpack.i.l.bf16 %v1136_v14  ;;  %v227_v5 = vsel %vm224_vm2, %v1132_v11, %v1133_v10  ;;  %v226_v3 = vsel %vm224_vm2, %v1133_v10, %v1127_v60 }
  0xab   : > { %v228_v18 = vpack.c.bf16 %v227_v5, %v227_v5  ;;  %v229_v19 = vpack.c.bf16 %v226_v3, %v226_v3  ;;  %v1168_v37 = vunpack.i.h.bf16 %v1166_v34  ;;  %v1167_v38 = vunpack.i.l.bf16 %v1166_v34 }
  0xac   : > { %v359_v22 = vsel %vm356_vm4, %v1137_v17, %v1138_v16 }
  0xad   : > { %v239_v25 = vsel %vm237_vm0, %v228_v18, 0  ;;  %v242_v26 = vsel %vm237_vm0, %v229_v19, 0  ;;  %v360_v27 = vpack.c.bf16 %v359_v22, %v359_v22  ;;  %v605_v45 = vsel %vm602_vm5, %v1167_v38, %v1168_v37 }
  0xae   : > { %254 = vmatpush.bf16.msra.mxu0 %v239_v25  ;;  %267 = vmatpush.bf16.msra.mxu1 %v242_v26  ;;  %v606_v49 = vpack.c.bf16 %v605_v45, %v605_v45 }
  0xaf   : > { %v369_v29 = vsel %vm237_vm0, %v360_v27, 0 }
  0xb0   : > { %384 = vmatpush.bf16.msrb.mxu2 %v369_v29  ;;  %v615_v53 = vsel %vm237_vm0, %v606_v49, 0  ;;  %v1034_v29 = vld [vmem:[%s1583_s1 + $0x10] sm:$0xf] }
  0xb1   : > { %v1141_v32 = vpop.permute.xlu1 %1140  ;;  %1020 = vmatmul.msk.bf16.vlgmr.msra.gmra.mxu0 %vm233_vm1, %v1019_v6  ;;  %1021 = vmatmul.msk.bf16.vlgmr.msra.gmra.mxu1 %vm233_vm1, %v1019_v6 }
  0xb2   : > { %318 = vmatpush.bf16.msrb.mxu0 %v293_v23  ;;  %331 = vmatpush.bf16.msrb.mxu1 %v296_v24  ;;  %v1143_v35 = vunpack.i.h.bf16 %v1141_v32  ;;  %v1142_v36 = vunpack.i.l.bf16 %v1141_v32 }
  0xb4   : > { %479 = vmatpush.bf16.msra.mxu2 %v454_v31  ;;  %v358_v39 = vsel %vm356_vm4, %v1138_v16, %v1142_v36  ;;  %v357_v40 = vsel %vm356_vm4, %v1142_v36, %v1143_v35  ;;  %v1038_v31 = vld [vmem:[%s1583_s1 + $0x14] sm:$0xf] }
  0xb5   : > { %v361_v41 = vpack.c.bf16 %v358_v39, %v358_v39  ;;  %v362_v42 = vpack.c.bf16 %v357_v40, %v357_v40 }
  0xb6   : > { %466 = vmatpush.bf16.msra.mxu1 %v451_v30 }
  0xb7   : > { %v372_v46 = vsel %vm237_vm0, %v361_v41, 0  ;;  %v375_v47 = vsel %vm237_vm0, %v362_v42, 0  ;;  %v1156_v48 = vpop.permute.xlu0 %1155 }
  0xb8   : > { %397 = vmatpush.bf16.msrb.mxu3 %v372_v46  ;;  %410 = vmatpush.bf16.msra.mxu0 %v375_v47  ;;  %v1158_v50 = vunpack.i.h.bf16 %v1156_v48  ;;  %v1157_v51 = vunpack.i.l.bf16 %v1156_v48 }
  0xb9   : > { %1027 = vmatmul.msk.bf16.vlgmr.msrb.gmra.mxu2 %vm233_vm1, %v1026_v43  ;;  %v1161_v52 = vpop.permute.xlu1 %1160 }
  0xba   : > { %v1163_v55 = vunpack.i.h.bf16 %v1161_v52  ;;  %v1162_v56 = vunpack.i.l.bf16 %v1161_v52  ;;  %v521_v58 = vsel %vm520_vm6, %v1157_v51, %v1158_v50  ;;  %v1042_v50 = vld [vmem:[%s1583_s1 + $0x18] sm:$0xf] }
  0xbb   : > { %1028 = vmatmul.msk.bf16.vlgmr.msrb.gmra.mxu3 %vm233_vm1, %v1026_v43  ;;  %v526_v59 = vpack.c.bf16 %v521_v58, %v521_v58 }
  0xbc   : > { %492 = vmatpush.bf16.msra.mxu3 %v457_v44  ;;  %v522_v60 = vsel %vm520_vm6, %v1163_v55, %v1157_v51  ;;  %v523_v61 = vsel %vm520_vm6, %v1162_v56, %v1163_v55 }
  0xbd   : > { %v525_v62 = vpack.c.bf16 %v522_v60, %v522_v60  ;;  %v539_v63 = vsel %vm237_vm0, %v526_v59, 0  ;;  %v524_v0 = vpack.c.bf16 %v523_v61, %v523_v61  ;;  %v1283_v60 = vmov 0   ;;  %v1046_v61 = vld [vmem:[%s1583_s1 + $0x1c] sm:$0xf] }
  0xbe   : > { %574 = vmatpush.bf16.msrb.mxu2 %v539_v63  ;;  %1194 = vset.pattern.permute.xlu0 %v1283_v60  ;;  %v307_v63 = vpop.f32.mrf.mxu3 }
  0xbf   : > { %v536_v1 = vsel %vm237_vm0, %v525_v62, 0  ;;  %v533_v2 = vsel %vm237_vm0, %v524_v0, 0  ;;  %914 = vperm.xlu0 %1194, %v911_v57   ;;  %v1050_v62 = vld [vmem:[%s1583_s1 + $0x20] sm:$0xf] }
  0xc0   : > { %630 = vmatpush.bf16.msrb.mxu3 %v615_v53 }
  0xc1   : > { %1024 = vmatmul.msk.bf16.vlgmr.msrb.gmra.mxu0 %vm233_vm1, %v1398_v54  ;;  %1025 = vmatmul.msk.bf16.vlgmr.msrb.gmra.mxu1 %vm233_vm1, %v1398_v54  ;;  %v1176_v4 = vpop.permute.xlu1 %1175  ;;  %v681_v54 = vpop.permute.xlu2 %680 }
  0xc2   : > { %561 = vmatpush.bf16.msrb.mxu1 %v536_v1  ;;  %548 = vmatpush.bf16.msrb.mxu0 %v533_v2  ;;  %v1178_v6 = vunpack.i.h.bf16 %v1176_v4  ;;  %v1177_v7 = vunpack.i.l.bf16 %v1176_v4 }
  0xc4   : > { %v604_v9 = vsel %vm602_vm5, %v1168_v37, %v1177_v7  ;;  %v603_v10 = vsel %vm602_vm5, %v1177_v7, %v1178_v6 }
  0xc5   : > { %v607_v14 = vpack.c.bf16 %v604_v9, %v604_v9  ;;  %v608_v15 = vpack.c.bf16 %v603_v10, %v603_v10 }
  0xc6   : > { %v309_v0 = vpop.f32.mrf.mxu3 }
  0xc7   : > { %v618_v18 = vsel %vm237_vm0, %v607_v14, 0  ;;  %v621_v21 = vsel %vm237_vm0, %v608_v15, 0 }
  0xc9   : > { %1032 = vmatmul.msk.bf16.vlgmr.msra.gmra.mxu2 %vm233_vm1, %v1030_v8  ;;  %v1171_v11 = vpop.permute.xlu0 %1170  ;;  %v683_v23 = vpop.permute.xlu1 %682 }
  0xca   : > { %v1173_v12 = vunpack.i.h.bf16 %v1171_v11  ;;  %v1172_v13 = vunpack.i.l.bf16 %v1171_v11  ;;  %v759_v27 = vpop.permute.xlu2 %758  ;;  %v685_v32 = vsel %vm684_vm7, %v681_v54, %v683_v23 }
  0xcb   : > { %1033 = vmatmul.msk.bf16.vlgmr.msra.gmra.mxu3 %vm233_vm1, %v1030_v8  ;;  %v690_v37 = vpack.c.bf16 %v685_v32, %v685_v32 }
  0xcc   : > { %v686_v16 = vsel %vm684_vm7, %v1173_v12, %v681_v54  ;;  %v687_v17 = vsel %vm684_vm7, %v1172_v13, %v1173_v12 }
  0xcd   : > { %v689_v5 = vpack.c.bf16 %v686_v16, %v686_v16  ;;  %v688_v3 = vpack.c.bf16 %v687_v17, %v687_v17 }
  0xcf   : > { %v697_v19 = vsel %vm237_vm0, %v688_v3, 0  ;;  %v700_v20 = vsel %vm237_vm0, %v689_v5, 0 }
  0xd0   : > { %712 = vmatpush.bf16.msra.mxu2 %v697_v19  ;;  %725 = vmatpush.bf16.msra.mxu3 %v700_v20 }
  0xd1   : > { %1029 = vmatmul.msk.bf16.vlgmr.msra.gmra.mxu0 %vm233_vm1, %v1026_v43  ;;  %1031 = vmatmul.msk.bf16.vlgmr.msra.gmra.mxu1 %vm233_vm1, %v1030_v8  ;;  %v1181_v22 = vpop.permute.xlu0 %1180  ;;  %v703_v43 = vsel %vm237_vm0, %v690_v37, 0 }
  0xd2   : > { %643 = vmatpush.bf16.msra.mxu0 %v618_v18  ;;  %v1183_v24 = vunpack.i.h.bf16 %v1181_v22  ;;  %v1182_v25 = vunpack.i.l.bf16 %v1181_v22  ;;  %656 = vmatpush.bf16.msra.mxu1 %v621_v21  ;;  %v1191_v46 = vpop.permute.xlu2 %1190 }
  0xd3   : > { %v1193_v48 = vunpack.i.h.bf16 %v1191_v46  ;;  %v1192_v49 = vunpack.i.l.bf16 %v1191_v46 }
  0xd4   : > { %v768_v26 = vsel %vm766_vm8, %v1182_v25, %v1183_v24  ;;  %v769_v33 = vsel %vm766_vm8, %v759_v27, %v1182_v25 }
  0xd5   : > { %v771_v28 = vpack.c.bf16 %v768_v26, %v768_v26  ;;  %v770_v39 = vpack.c.bf16 %v769_v33, %v769_v33  ;;  %v851_v53 = vsel %vm848_vm9, %v1192_v49, %v1193_v48 }
  0xd6   : > { %v852_v56 = vpack.c.bf16 %v851_v53, %v851_v53 }
  0xd7   : > { %v782_v30 = vsel %vm237_vm0, %v771_v28, 0  ;;  %v1186_v35 = vpop.permute.xlu1 %1185  ;;  %v779_v44 = vsel %vm237_vm0, %v770_v39, 0 }
  0xd8   : > { %v1188_v40 = vunpack.i.h.bf16 %v1186_v35  ;;  %v1187_v41 = vunpack.i.l.bf16 %v1186_v35  ;;  %v861_v59 = vsel %vm237_vm0, %v852_v56, 0 }
  0xd9   : > { %1037 = vmatmul.msk.bf16.vlgmr.msrb.gmra.mxu2 %vm233_vm1, %v1034_v29  ;;  %v765_v34 = vpop.permute.xlu0 %764 }
  0xda   : > { %v767_v36 = vsel %vm766_vm8, %v1183_v24, %v765_v34  ;;  %807 = vmatpush.bf16.msrb.mxu2 %v782_v30  ;;  %v849_v45 = vsel %vm848_vm9, %v1187_v41, %v1188_v40  ;;  %v850_v52 = vsel %vm848_vm9, %v1193_v48, %v1187_v41 }
  0xdb   : > { %1039 = vmatmul.msk.bf16.vlgmr.msrb.gmra.mxu3 %vm233_vm1, %v1038_v31  ;;  %v772_v38 = vpack.c.bf16 %v767_v36, %v767_v36  ;;  %v854_v47 = vpack.c.bf16 %v849_v45, %v849_v45  ;;  %v853_v55 = vpack.c.bf16 %v850_v52, %v850_v52 }
  0xdd   : > { %v785_v42 = vsel %vm237_vm0, %v772_v38, 0  ;;  %v867_v51 = vsel %vm237_vm0, %v854_v47, 0  ;;  %v864_v58 = vsel %vm237_vm0, %v853_v55, 0 }
  0xde   : > { %820 = vmatpush.bf16.msrb.mxu3 %v785_v42 }
  0xe1   : > { %1035 = vmatmul.msk.bf16.vlgmr.msrb.gmra.mxu0 %vm233_vm1, %v1034_v29  ;;  %1036 = vmatmul.msk.bf16.vlgmr.msrb.gmra.mxu1 %vm233_vm1, %v1034_v29 }
  0xe2   : > { %738 = vmatpush.bf16.msrb.mxu0 %v703_v43  ;;  %794 = vmatpush.bf16.msrb.mxu1 %v779_v44 }
  0xe9   : > { %1043 = vmatmul.msk.bf16.vlgmr.msra.gmra.mxu2 %vm233_vm1, %v1042_v50 }
  0xea   : > { %902 = vmatpush.bf16.msra.mxu2 %v867_v51 }
  0xeb   : > { %1044 = vmatmul.msk.bf16.vlgmr.msra.gmra.mxu3 %vm233_vm1, %v1042_v50 }
  0xf1   : > { %1040 = vmatmul.msk.bf16.vlgmr.msra.gmra.mxu0 %vm233_vm1, %v1038_v31  ;;  %1041 = vmatmul.msk.bf16.vlgmr.msra.gmra.mxu1 %vm233_vm1, %v1038_v31 }
  0xf2   : > { %889 = vmatpush.bf16.msra.mxu1 %v864_v58  ;;  %876 = vmatpush.bf16.msra.mxu0 %v861_v59 }
  0xf9   : > { %1048 = vmatmul.msk.bf16.vlgmr.msrb.gmra.mxu2 %vm233_vm1, %v1046_v61 }
  0xfb   : > { %1049 = vmatmul.msk.bf16.vlgmr.msrb.gmra.mxu3 %vm233_vm1, %v1046_v61 }
 0x101   : > { %1045 = vmatmul.msk.bf16.vlgmr.msrb.gmra.mxu0 %vm233_vm1, %v1042_v50  ;;  %1047 = vmatmul.msk.bf16.vlgmr.msrb.gmra.mxu1 %vm233_vm1, %v1046_v61 }
 0x109   : > { %1053 = vmatmul.msk.bf16.vlgmr.msra.gmra.mxu2 %vm233_vm1, %v1050_v62 }
 0x111   : > { %1051 = vmatmul.msk.bf16.vlgmr.msra.gmra.mxu0 %vm233_vm1, %v1050_v62  ;;  %1052 = vmatmul.msk.bf16.vlgmr.msra.gmra.mxu1 %vm233_vm1, %v1050_v62 }
 0x12c   : > { %v282_v1 = vpop.f32.mrf.mxu2 }
 0x12e   : > { %v256_v2 = vpop.f32.mrf.mxu0  ;;  %v269_v4 = vpop.f32.mrf.mxu1 }
 0x12f   : > { %v308_v6 = vadd.f32 %v307_v63, %v256_v2 }
 0x134   : > { %v284_v7 = vpop.f32.mrf.mxu2 }
 0x136   : > { %v258_v8 = vpop.f32.mrf.mxu0  ;;  %v271_v9 = vpop.f32.mrf.mxu1 }
 0x13c   : > { %v386_v10 = vpop.f32.mrf.mxu2 }
 0x13d   : > { %v416_v11 = vadd.f32 %v386_v10, %v308_v6 }
 0x13e   : > { %v320_v54 = vpop.f32.mrf.mxu0  ;;  %v333_v12 = vpop.f32.mrf.mxu1 }
 0x13f   : > { %v321_v13 = vadd.f32 %v320_v54, %v269_v4  ;;  %v334_v14 = vadd.f32 %v333_v12, %v282_v1  ;;  %v399_v15 = vpop.f32.mrf.mxu3  ;;  %v915_v4 = vpop.permute.xlu0 %914 }
 0x141   : > { %v417_v16 = vadd.f32 %v399_v15, %v321_v13 }
 0x144   : > { %v388_v17 = vpop.f32.mrf.mxu2 }
 0x146   : > { %v322_v5 = vpop.f32.mrf.mxu0  ;;  %v335_v3 = vpop.f32.mrf.mxu1 }
 0x147   : > { %v401_v18 = vpop.f32.mrf.mxu3 }
 0x14c   : > { %v481_v19 = vpop.f32.mrf.mxu2 }
 0x14d   : > { %v499_v49 = vadd.f32 %v481_v19, %v417_v16 }
 0x14e   : > { %v412_v20 = vpop.f32.mrf.mxu0  ;;  %v468_v21 = vpop.f32.mrf.mxu1 }
 0x14f   : > { %v494_v22 = vpop.f32.mrf.mxu3  ;;  %v418_v44 = vadd.f32 %v412_v20, %v334_v14  ;;  %v498_v50 = vadd.f32 %v468_v21, %v416_v11 }
 0x151   : > { %v500_v48 = vadd.f32 %v494_v22, %v418_v44 }
 0x154   : > { %v483_v23 = vpop.f32.mrf.mxu2 }
 0x156   : > { %v414_v24 = vpop.f32.mrf.mxu0  ;;  %v470_v25 = vpop.f32.mrf.mxu1 }
 0x157   : > { %v496_v26 = vpop.f32.mrf.mxu3 }
 0x15c   : > { %v576_v27 = vpop.f32.mrf.mxu2 }
 0x15d   : > { %v582_v51 = vadd.f32 %v576_v27, %v500_v48 }
 0x15e   : > { %v550_v28 = vpop.f32.mrf.mxu0  ;;  %v563_v29 = vpop.f32.mrf.mxu1 }
 0x15f   : > { %v632_v30 = vpop.f32.mrf.mxu3  ;;  %v580_v53 = vadd.f32 %v550_v28, %v498_v50  ;;  %v581_v55 = vadd.f32 %v563_v29, %v499_v49 }
 0x161   : > { %v662_v62 = vadd.f32 %v632_v30, %v580_v53 }
 0x164   : > { %v578_v31 = vpop.f32.mrf.mxu2 }
 0x166   : > { %v552_v32 = vpop.f32.mrf.mxu0  ;;  %v565_v33 = vpop.f32.mrf.mxu1 }
 0x167   : > { %v634_v34 = vpop.f32.mrf.mxu3 }
 0x16c   : > { %v714_v35 = vpop.f32.mrf.mxu2 }
 0x16d   : > { %v744_v63 = vadd.f32 %v714_v35, %v662_v62 }
 0x16e   : > { %v645_v36 = vpop.f32.mrf.mxu0  ;;  %v658_v37 = vpop.f32.mrf.mxu1 }
 0x16f   : > { %v727_v38 = vpop.f32.mrf.mxu3  ;;  %v664_v56 = vadd.f32 %v658_v37, %v582_v51  ;;  %v663_v57 = vadd.f32 %v645_v36, %v581_v55 }
 0x171   : > { %v745_v0 = vadd.f32 %v727_v38, %v663_v57 }
 0x174   : > { %v716_v39 = vpop.f32.mrf.mxu2 }
 0x176   : > { %v647_v40 = vpop.f32.mrf.mxu0  ;;  %v660_v41 = vpop.f32.mrf.mxu1 }
 0x177   : > { %v729_v42 = vpop.f32.mrf.mxu3 }
 0x17c   : > { %v809_v43 = vpop.f32.mrf.mxu2 }
 0x17d   : > { %v827_v6 = vadd.f32 %v809_v43, %v745_v0 }
 0x17e   : > { %v740_v45 = vpop.f32.mrf.mxu0  ;;  %v796_v46 = vpop.f32.mrf.mxu1 }
 0x17f   : > { %v822_v47 = vpop.f32.mrf.mxu3  ;;  %v746_v60 = vadd.f32 %v740_v45, %v664_v56  ;;  %v826_v7 = vadd.f32 %v796_v46, %v744_v63 }
 0x181   : > { %v828_v1 = vadd.f32 %v822_v47, %v746_v60 }
 0x184   : > { %v811_v52 = vpop.f32.mrf.mxu2 }
 0x186   : > { %v742_v58 = vpop.f32.mrf.mxu0  ;;  %v798_v59 = vpop.f32.mrf.mxu1 }
 0x187   : > { %v824_v61 = vpop.f32.mrf.mxu3 }
 0x18c   : > { %v904_v2 = vpop.f32.mrf.mxu2 }
 0x18d   : > { %v910_v8 = vadd.f32 %v904_v2, %v828_v1 }
 0x18e   : > { %v878_v9 = vpop.f32.mrf.mxu0  ;;  %v891_v10 = vpop.f32.mrf.mxu1 }
 0x18f   : > { %v919_v11 = vadd.f32 %v915_v4, %v910_v8  ;;  %v908_v54 = vadd.f32 %v878_v9, %v826_v7  ;;  %v909_v12 = vadd.f32 %v891_v10, %v827_v6 }
 0x191   : > { %922 = vst [vmem:[%s177_s15 + $0x10] sm:$0xff] %v919_v11  ;;  %v917_v13 = vadd.f32 %v915_v4, %v908_v54  ;;  %v918_v14 = vadd.f32 %v915_v4, %v909_v12 }
 0x193   : > { %920 = vst [vmem:[%s177_s15] sm:$0xff] %v917_v13 }
 0x194   : > { %921 = vst [vmem:[%s177_s15 + $0x8] sm:$0xff] %v918_v14  ;;  %v906_v15 = vpop.f32.mrf.mxu2 }
 0x195   : > { %1222 = shalt.err (!%p1219_p5)
}
 0x196   : > { %1060 = dma.vmem_to_hbm [thread:$0]  (%p1344_p4), %s940_s4, 384, %s942_s5, %s924_s6   ;;  %v880_v16 = vpop.f32.mrf.mxu0  ;;  %v893_v17 = vpop.f32.mrf.mxu1 }
 0x197 PF: > { %p1066_p6 = scmp.ge.s32.totalorder %s1273_s17, 2  ;;  %s953_s21 = sand.u32 1, %s1253_s12  }
 0x198   : > { %s954_s23 = scalar_lea.sflag [#allocation3], %s953_s21 }
 0x199   : > { %p1063_p7 = pnand %p1066_p6, %p1351_p8 }
 0x19b   : > { %p1064_p9 = pneg %p1063_p7 }
 0x19d   : > { %1248 = dma.done.wait (%p1064_p9), %s954_s23, 384  }
 0x19e   : > { %1250 = vsyncadd (%p1064_p9), %s954_s23, 4294966912  ;;  %s16_s17 = sadd.s32 1, %s1273_s17   ;;  %s1588_s12 = smov %s1257_s13 }
 0x19f   : > { %p13_p10 = scmp.ge.s32.totalorder %s16_s17, 4   ;;  %s1589_s13 = smov %s1261_s14 }
 0x1a0   : > { %s1590_s14 = smov %s1357_s25  ;;  %s1591_s15 = smov %s1269_s16 }
 0x1a1   : > { %s1592_s16 = smov %s1594_s20  ;;  %15 = sbr.rel (!%p13_p10) target bundleno = 4 (0x4), region = 84 }
 0x1a6   :  { %960 = vsyncpa [#allocation3], 1 }
 0x1a7   :  { %962 = vsyncpa [#allocation3 + $0x1], 1 }

</bundles_post_ra>
